<compile_context>
chip_gen: v5e
topology: v5e:2x2
jax: 0.10.0
libtpu: 0.0.40
codegen_flags: <defaults>
</compile_context>

<pallas_src>
import math
from functools import partial

import jax
import jax.numpy as jnp
from jax.experimental import pallas as pl
from jax.experimental.pallas import tpu as pltpu


# ----------------------------------------------------------------------------- #
# Helpers
# ----------------------------------------------------------------------------- #
def _round_up(v, m):
    return -(-v // m) * m


def _is_v5():
    """128-wide MXU generations (v5e/v5p) -> prefer 128 tiles; otherwise 256."""
    try:
        kind = jax.devices()[0].device_kind.lower()
    except Exception:
        return False
    return "v5" in kind


def _resident_spec(block_shape, index_map):
    """BlockSpec for a grid-invariant (resident) operand.

    Requests single buffering when the installed Pallas supports per-block
    pipeline modes; the second pipeline buffer of a constant block is VMEM waste.
    """
    try:
        return pl.BlockSpec(block_shape, index_map, pipeline_mode=pl.Buffered(1))
    except (TypeError, ValueError, AttributeError):
        return pl.BlockSpec(block_shape, index_map)


def _plain_spec(block_shape, index_map):
    return pl.BlockSpec(block_shape, index_map)


def _vmem_limit(estimate_bytes):
    # Generous headroom for compiler temporaries / spills; clamp to a value that is
    # a legal scoped-VMEM limit on every generation (v7x has only 64 MiB physical).
    return int(min(max(estimate_bytes * 1.5 + (2 << 20), 4 << 20), 64 << 20))


def _proj_vmem_estimate(dim, heads, dim_head, block_n, wbuf):
    lane, sub = 128, 8
    dimp = _round_up(dim, lane)
    dp = _round_up(dim_head, lane)
    hdp = _round_up(heads * dim_head, lane)
    tnp = _round_up(block_n, sub)
    x_blk = 2 * tnp * dimp * 2                         # bf16 x tile, double-buffered
    w_blk = 3 * wbuf * _round_up(dim, sub) * hdp * 2   # w_q / w_k / w_v (bf16)
    out_blk = 3 * 2 * heads * tnp * dp * 2             # q/k/v tiles (bf16), double-buf
    tmp = 4 * tnp * hdp * 4                            # f32 matmul results + relayout
    return x_blk + w_blk + out_blk + tmp


def _flash_vmem_estimate(dim, heads, dim_head, block_q, block_kv, out_itemsize, wbuf):
    lane, sub = 128, 8
    dimp = _round_up(dim, lane)
    dp = _round_up(dim_head, lane)
    tqp = _round_up(block_q, sub)
    tkvp = _round_up(block_kv, sub)
    q_blk = 2 * heads * tqp * dp * 2                   # bf16, double-buffered
    kv_blk = 2 * 2 * heads * tkvp * dp * 2             # k + v, bf16, double-buffered
    w_blk = wbuf * _round_up(heads * dim_head, sub) * dimp * 2
    b_blk = sub * dimp * 4
    o_blk = 2 * tqp * dimp * out_itemsize
    stats = 2 * heads * tqp * lane * 4                 # m/l are lane-padded to 128
    acc = heads * tqp * dp * 4
    tmp = 3 * heads * tqp * _round_up(block_kv, lane) * 4   # s / p / exp temporaries
    return q_blk + kv_blk + w_blk + b_blk + o_blk + stats + acc + tmp


# ----------------------------------------------------------------------------- #
# Pass 1: QKV projection -> head-major bf16 Q (pre-scaled), K, V
# ----------------------------------------------------------------------------- #
def _qkv_proj_kernel(x_ref, wq_ref, wk_ref, wv_ref, q_ref, k_ref, v_ref, *,
                     heads, dim_head, scale):
    # x_ref:  (1, TN, DIM) bf16 token tile
    # w*_ref: (DIM, H*D)   bf16, resident
    # outputs: (1, H, TN, D) bf16, head-major (no relayout needed in the hot loop)
    H, D = heads, dim_head
    x = x_ref[0]                                       # (TN, DIM) bf16
    TN = x.shape[0]

    def project(w_ref, mult):
        p = jnp.dot(x, w_ref[...], preferred_element_type=jnp.float32)  # (TN, H*D) f32
        if mult is not None:
            p = p * mult
        return jnp.transpose(p.reshape(TN, H, D), (1, 0, 2))             # (H, TN, D)

    q_ref[0] = project(wq_ref, scale).astype(q_ref.dtype)
    k_ref[0] = project(wk_ref, None).astype(k_ref.dtype)
    v_ref[0] = project(wv_ref, None).astype(v_ref.dtype)


# ----------------------------------------------------------------------------- #
# Pass 2: flash attention with fused output projection + bias
# ----------------------------------------------------------------------------- #
def _mhsa_flash_kernel(q_ref, k_ref, v_ref, w_out_ref, b_out_ref, o_ref,
                       m_sc, l_sc, acc_sc):
    # q_ref:     (1, H, TQ,  D) bf16, pre-scaled
    # k_ref/v_ref: (1, H, TKV, D) bf16
    # w_out_ref: (H*D, DIM) bf16, resident
    # b_out_ref: (1, DIM) f32, resident
    # scratch:   m_sc/l_sc (H, TQ, 1) f32, acc_sc (H, TQ, D) f32
    H, TQ, D = acc_sc.shape
    HD = H * D
    kv_idx = pl.program_id(2)

    # ---- per-q-tile init of the online-softmax state ----
    @pl.when(kv_idx == 0)
    def _init():
        m_sc[...] = jnp.full_like(m_sc, -jnp.inf)
        l_sc[...] = jnp.zeros_like(l_sc)
        acc_sc[...] = jnp.zeros_like(acc_sc)

    q = q_ref[0]                                                        # (H, TQ, D) bf16
    k = k_ref[0]                                                        # (H, TKV, D) bf16
    v = v_ref[0]                                                        # (H, TKV, D) bf16

    # ---- head-batched scores + online softmax (elementwise math in f32) ----
    s = jnp.einsum("hqd,hkd->hqk", q, k,
                   preferred_element_type=jnp.float32)                  # (H, TQ, TKV)
    m_prev = m_sc[...]                                                  # (H, TQ, 1)
    m_new = jnp.maximum(m_prev, jnp.max(s, axis=-1, keepdims=True))
    alpha = jnp.exp(m_prev - m_new)
    p = jnp.exp(s - m_new)                                              # (H, TQ, TKV)
    l_sc[...] = alpha * l_sc[...] + jnp.sum(p, axis=-1, keepdims=True)
    acc_sc[...] = alpha * acc_sc[...] + jnp.einsum(
        "hqk,hkd->hqd", p.astype(jnp.bfloat16), v,
        preferred_element_type=jnp.float32)                             # (H, TQ, D)
    m_sc[...] = m_new

    # ---- epilogue: normalize once, fold heads, output projection + fused bias ----
    @pl.when(kv_idx == pl.num_programs(2) - 1)
    def _finalize():
        inv_l = pl.reciprocal(l_sc[...], approx=True)                   # (H, TQ, 1)
        out = acc_sc[...] * inv_l                                       # (H, TQ, D)
        out = jnp.transpose(out, (1, 0, 2)).reshape(TQ, HD)             # 'h q d -> q (h d)'
        y = jnp.dot(out.astype(jnp.bfloat16), w_out_ref[...],
                    preferred_element_type=jnp.float32)                 # (TQ, DIM)
        y = y + b_out_ref[...]
        # TODO(synk): nn.Dropout(0.1) is identity in eval mode; training-mode dropout
        # (random mask) is not implemented.
        o_ref[0] = y.astype(o_ref.dtype)


# ----------------------------------------------------------------------------- #
# Wrapper
# ----------------------------------------------------------------------------- #
def mhsa_pallas(x, w_qkv, w_out, b_out, *, heads, dim_head,
                block_q=None, block_kv=None, block_n=None,
                single_buffer_resident=True):
    B, N, DIM = x.shape
    HD = heads * dim_head
    assert w_qkv.shape == (DIM, 3 * HD)
    assert w_out.shape == (HD, DIM)
    scale = dim_head ** (-0.5)

    # Generation-aware tile defaults: 128 for v5* (4x128 MXU, 16 MiB scoped default),
    # 256 for v6e/v7x (2x256 MXU). For v7x megacore balance, prefer B * n_q even.
    default_blk = 128 if _is_v5() else 256
    if block_q is None:
        block_q = min(N, default_blk)
    if block_kv is None:
        block_kv = min(N, default_blk)
    if block_n is None:
        block_n = min(N, default_blk)
    assert N % block_q == 0 and N % block_kv == 0 and N % block_n == 0
    for blk in (block_q, block_kv, block_n):
        assert blk == N or blk % 8 == 0, "tile sizes must be sublane-aligned"
    n_q, n_kv, n_n = N // block_q, N // block_kv, N // block_n

    # bf16 streamed activations / MXU operands (f32 accumulation in-kernel).
    x_bf = x.astype(jnp.bfloat16)
    w_q, w_k, w_v = [w.astype(jnp.bfloat16) for w in jnp.split(w_qkv, 3, axis=-1)]
    w_out_bf = w_out.astype(jnp.bfloat16)
    b_out_2d = b_out.reshape(1, DIM).astype(jnp.float32)

    resident = _resident_spec if single_buffer_resident else _plain_spec
    wbuf = 1 if single_buffer_resident else 2

    # ---------------- pass 1: QKV projection (hoisted out of the kv loop) ---------------- #
    proj_kernel = partial(_qkv_proj_kernel, heads=heads, dim_head=dim_head, scale=scale)
    qkv_shape = jax.ShapeDtypeStruct((B, heads, N, dim_head), jnp.bfloat16)
    q_h, k_h, v_h = pl.pallas_call(
        proj_kernel,
        out_shape=(qkv_shape, qkv_shape, qkv_shape),
        grid_spec=pltpu.PrefetchScalarGridSpec(
            num_scalar_prefetch=0,
            grid=(B, n_n),
            in_specs=[
                pl.BlockSpec((1, block_n, DIM), lambda b, i: (b, i, 0)),   # x tokens
                resident((DIM, HD), lambda b, i: (0, 0)),                  # w_q
                resident((DIM, HD), lambda b, i: (0, 0)),                  # w_k
                resident((DIM, HD), lambda b, i: (0, 0)),                  # w_v
            ],
            out_specs=[
                pl.BlockSpec((1, heads, block_n, dim_head), lambda b, i: (b, 0, i, 0)),
                pl.BlockSpec((1, heads, block_n, dim_head), lambda b, i: (b, 0, i, 0)),
                pl.BlockSpec((1, heads, block_n, dim_head), lambda b, i: (b, 0, i, 0)),
            ],
        ),
        compiler_params=pltpu.CompilerParams(
            dimension_semantics=("parallel", "parallel"),
            vmem_limit_bytes=_vmem_limit(
                _proj_vmem_estimate(DIM, heads, dim_head, block_n, wbuf)),
        ),
    )(x_bf, w_q, w_k, w_v)

    # ---------------- pass 2: flash attention + fused output projection ---------------- #
    out = pl.pallas_call(
        _mhsa_flash_kernel,
        out_shape=jax.ShapeDtypeStruct((B, N, DIM), x.dtype),
        grid_spec=pltpu.PrefetchScalarGridSpec(
            num_scalar_prefetch=0,
            grid=(B, n_q, n_kv),
            in_specs=[
                pl.BlockSpec((1, heads, block_q, dim_head),
                             lambda b, i, j: (b, 0, i, 0)),                # Q tile
                pl.BlockSpec((1, heads, block_kv, dim_head),
                             lambda b, i, j: (b, 0, j, 0)),                # K tile
                pl.BlockSpec((1, heads, block_kv, dim_head),
                             lambda b, i, j: (b, 0, j, 0)),                # V tile
                resident((HD, DIM), lambda b, i, j: (0, 0)),               # out weights
                resident((1, DIM), lambda b, i, j: (0, 0)),                # out bias
            ],
            out_specs=pl.BlockSpec((1, block_q, DIM), lambda b, i, j: (b, i, 0)),
            scratch_shapes=[
                pltpu.VMEM((heads, block_q, 1), jnp.float32),              # m (running max)
                pltpu.VMEM((heads, block_q, 1), jnp.float32),              # l (running sum)
                pltpu.VMEM((heads, block_q, dim_head), jnp.float32),       # acc
            ],
        ),
        compiler_params=pltpu.CompilerParams(
            dimension_semantics=("parallel", "parallel", "arbitrary"),
            vmem_limit_bytes=_vmem_limit(
                _flash_vmem_estimate(DIM, heads, dim_head, block_q, block_kv,
                                     x.dtype.itemsize, wbuf)),
        ),
    )(q_h, k_h, v_h, w_out_bf, b_out_2d)
    return out


# ----------------------------------------------------------------------------- #
# Pure-JAX reference matching the PyTorch forward (eval mode)
# ----------------------------------------------------------------------------- #
def mhsa_reference(x, w_qkv, w_out, b_out, *, heads, dim_head):
    B, N, DIM = x.shape
    HD = heads * dim_head
    qkv = x @ w_qkv                                     # (B, N, 3*HD)
    q, k, v = jnp.split(qkv, 3, axis=-1)                # each (B, N, HD)

    def to_heads(t):
        return t.reshape(B, N, heads, dim_head).transpose(0, 2, 1, 3)  # (B, H, N, D)

    q, k, v = map(to_heads, (q, k, v))
    dots = jnp.einsum("bhid,bhjd->bhij", q, k) * (dim_head ** -0.5)
    attn = jax.nn.softmax(dots, axis=-1)
    out = jnp.einsum("bhij,bhjd->bhid", attn, v)        # (B, H, N, D)
    out = out.transpose(0, 2, 1, 3).reshape(B, N, HD)   # 'b h n d -> b n (h d)'
    return out @ w_out + b_out


if __name__ == "__main__":
    # Small shapes consistent with the module's forward: x is (batch, seq, dim).
    B, N, DIM = 2, 16, 32
    HEADS, DIM_HEAD = 4, 32
    HD = HEADS * DIM_HEAD

    key = jax.random.PRNGKey(0)
    k_x, k_qkv, k_out_w, k_out_b = jax.random.split(key, 4)

    x = jax.random.normal(k_x, (B, N, DIM), dtype=jnp.float32)

    # Deterministic PyTorch-style uniform(-1/sqrt(fan_in), 1/sqrt(fan_in)) init.
    bound_qkv = 1.0 / math.sqrt(DIM)
    w_qkv = jax.random.uniform(k_qkv, (DIM, 3 * HD), jnp.float32,
                               minval=-bound_qkv, maxval=bound_qkv)
    bound_out = 1.0 / math.sqrt(HD)
    w_out = jax.random.uniform(k_out_w, (HD, DIM), jnp.float32,
                               minval=-bound_out, maxval=bound_out)
    b_out = jax.random.uniform(k_out_b, (DIM,), jnp.float32,
                               minval=-bound_out, maxval=bound_out)

    # block_q = block_kv = block_n = 8 -> multi-tile grids per batch element,
    # exercising both the projection tiling and the online-softmax accumulation path.
    run = partial(mhsa_pallas, x, w_qkv, w_out, b_out,
                  heads=HEADS, dim_head=DIM_HEAD,
                  block_q=8, block_kv=8, block_n=8)
    try:
        y = jax.block_until_ready(run())
    except Exception:
        # Fallback for Pallas builds that reject single-buffered resident blocks.
        y = jax.block_until_ready(run(single_buffer_resident=False))

    y_ref = mhsa_reference(x, w_qkv, w_out, b_out, heads=HEADS, dim_head=DIM_HEAD)
    assert y.shape == (B, N, DIM)
    max_err = float(jnp.max(jnp.abs(y - y_ref)))
    # bf16 MXU operands and bf16 Q/K/V streaming -> looser tolerance than pure f32.
    assert jnp.allclose(y, y_ref, atol=2e-2, rtol=2e-2), \
        f"mismatch vs reference (max abs err {max_err})"

    print("KERNEL_OK")
</pallas_src>

<mosaic_0001>
module attributes {stable_mosaic.version = 11 : i64} {
  func.func @_qkv_proj_kernel(%arg0: i32, %arg1: i32, %arg2: memref<1x8x32xbf16, #tpu.memory_space<vmem>>, %arg3: memref<32x128xbf16, #tpu.memory_space<vmem>>, %arg4: memref<32x128xbf16, #tpu.memory_space<vmem>>, %arg5: memref<32x128xbf16, #tpu.memory_space<vmem>>, %arg6: memref<1x4x8x32xbf16, #tpu.memory_space<vmem>>, %arg7: memref<1x4x8x32xbf16, #tpu.memory_space<vmem>>, %arg8: memref<1x4x8x32xbf16, #tpu.memory_space<vmem>>) attributes {dimension_semantics = [#tpu.dimension_semantics<parallel>, #tpu.dimension_semantics<parallel>], iteration_bounds = array<i64: 2, 2>, scalar_prefetch = 0 : i64, scratch_operands = 0 : i64, tpu.core_type = #tpu.core_type<tc>, window_params = [{transform_indices = @transform_0, window_bounds = array<i64: 1, 8, 32>}, {pipeline_mode = #tpu.pipeline_mode<synchronous>, transform_indices = @transform_1, window_bounds = array<i64: 32, 128>}, {pipeline_mode = #tpu.pipeline_mode<synchronous>, transform_indices = @transform_2, window_bounds = array<i64: 32, 128>}, {pipeline_mode = #tpu.pipeline_mode<synchronous>, transform_indices = @transform_3, window_bounds = array<i64: 32, 128>}, {transform_indices = @transform_4, window_bounds = array<i64: 1, 4, 8, 32>}, {transform_indices = @transform_5, window_bounds = array<i64: 1, 4, 8, 32>}, {transform_indices = @transform_6, window_bounds = array<i64: 1, 4, 8, 32>}]} {
    %c0 = arith.constant 0 : index
    %c0_0 = arith.constant 0 : index
    %c0_1 = arith.constant 0 : index
    %0 = vector.load %arg2[%c0, %c0_0, %c0_1] : memref<1x8x32xbf16, #tpu.memory_space<vmem>>, vector<1x8x32xbf16>
    %1 = vector.shape_cast %0 : vector<1x8x32xbf16> to vector<8x32xbf16>
    %c0_2 = arith.constant 0 : index
    %c0_3 = arith.constant 0 : index
    %2 = vector.load %arg3[%c0_2, %c0_3] : memref<32x128xbf16, #tpu.memory_space<vmem>>, vector<32x128xbf16>
    %cst = arith.constant dense<0.000000e+00> : vector<8x128xf32>
    %3 = tpu.matmul %1, %2, %cst {dimension_numbers = #tpu.dot_dimension_numbers<[1], [0], [0], [1], [0, 0, 1, 1], [], []>} : vector<8x32xbf16>, vector<32x128xbf16>, vector<8x128xf32> -> vector<8x128xf32>
    %cst_4 = arith.constant 0.176776692 : f32
    %4 = vector.broadcast %cst_4 : f32 to vector<8x128xf32>
    %5 = arith.mulf %3, %4 : vector<8x128xf32>
    %6 = vector.shape_cast %5 : vector<8x128xf32> to vector<8x4x32xf32>
    %7 = tpu.transpose %6, [1, 0, 2] : vector<8x4x32xf32> -> vector<4x8x32xf32>
    %8 = arith.truncf %7 : vector<4x8x32xf32> to vector<4x8x32xbf16>
    %c0_5 = arith.constant 0 : index
    %c0_6 = arith.constant 0 : index
    %c0_7 = arith.constant 0 : index
    %c0_8 = arith.constant 0 : index
    %9 = vector.load %arg6[%c0_5, %c0_6, %c0_7, %c0_8] : memref<1x4x8x32xbf16, #tpu.memory_space<vmem>>, vector<1x4x8x32xbf16>
    %10 = vector.shape_cast %9 : vector<1x4x8x32xbf16> to vector<4x8x32xbf16>
    %11 = vector.shape_cast %8 : vector<4x8x32xbf16> to vector<1x4x8x32xbf16>
    tpu.vector_store %arg6[%c0_5, %c0_6, %c0_7, %c0_8], %11 {strides = array<i32>} : memref<1x4x8x32xbf16, #tpu.memory_space<vmem>>, vector<1x4x8x32xbf16>,
    %c0_9 = arith.constant 0 : index
    %c0_10 = arith.constant 0 : index
    %12 = vector.load %arg4[%c0_9, %c0_10] : memref<32x128xbf16, #tpu.memory_space<vmem>>, vector<32x128xbf16>
    %cst_11 = arith.constant dense<0.000000e+00> : vector<8x128xf32>
    %13 = tpu.matmul %1, %12, %cst_11 {dimension_numbers = #tpu.dot_dimension_numbers<[1], [0], [0], [1], [0, 0, 1, 1], [], []>} : vector<8x32xbf16>, vector<32x128xbf16>, vector<8x128xf32> -> vector<8x128xf32>
    %14 = vector.shape_cast %13 : vector<8x128xf32> to vector<8x4x32xf32>
    %15 = tpu.transpose %14, [1, 0, 2] : vector<8x4x32xf32> -> vector<4x8x32xf32>
    %16 = arith.truncf %15 : vector<4x8x32xf32> to vector<4x8x32xbf16>
    %c0_12 = arith.constant 0 : index
    %c0_13 = arith.constant 0 : index
    %c0_14 = arith.constant 0 : index
    %c0_15 = arith.constant 0 : index
    %17 = vector.load %arg7[%c0_12, %c0_13, %c0_14, %c0_15] : memref<1x4x8x32xbf16, #tpu.memory_space<vmem>>, vector<1x4x8x32xbf16>
    %18 = vector.shape_cast %17 : vector<1x4x8x32xbf16> to vector<4x8x32xbf16>
    %19 = vector.shape_cast %16 : vector<4x8x32xbf16> to vector<1x4x8x32xbf16>
    tpu.vector_store %arg7[%c0_12, %c0_13, %c0_14, %c0_15], %19 {strides = array<i32>} : memref<1x4x8x32xbf16, #tpu.memory_space<vmem>>, vector<1x4x8x32xbf16>,
    %c0_16 = arith.constant 0 : index
    %c0_17 = arith.constant 0 : index
    %20 = vector.load %arg5[%c0_16, %c0_17] : memref<32x128xbf16, #tpu.memory_space<vmem>>, vector<32x128xbf16>
    %cst_18 = arith.constant dense<0.000000e+00> : vector<8x128xf32>
    %21 = tpu.matmul %1, %20, %cst_18 {dimension_numbers = #tpu.dot_dimension_numbers<[1], [0], [0], [1], [0, 0, 1, 1], [], []>} : vector<8x32xbf16>, vector<32x128xbf16>, vector<8x128xf32> -> vector<8x128xf32>
    %22 = vector.shape_cast %21 : vector<8x128xf32> to vector<8x4x32xf32>
    %23 = tpu.transpose %22, [1, 0, 2] : vector<8x4x32xf32> -> vector<4x8x32xf32>
    %24 = arith.truncf %23 : vector<4x8x32xf32> to vector<4x8x32xbf16>
    %c0_19 = arith.constant 0 : index
    %c0_20 = arith.constant 0 : index
    %c0_21 = arith.constant 0 : index
    %c0_22 = arith.constant 0 : index
    %25 = vector.load %arg8[%c0_19, %c0_20, %c0_21, %c0_22] : memref<1x4x8x32xbf16, #tpu.memory_space<vmem>>, vector<1x4x8x32xbf16>
    %26 = vector.shape_cast %25 : vector<1x4x8x32xbf16> to vector<4x8x32xbf16>
    %27 = vector.shape_cast %24 : vector<4x8x32xbf16> to vector<1x4x8x32xbf16>
    tpu.vector_store %arg8[%c0_19, %c0_20, %c0_21, %c0_22], %27 {strides = array<i32>} : memref<1x4x8x32xbf16, #tpu.memory_space<vmem>>, vector<1x4x8x32xbf16>,
    return
  }
  func.func @transform_0(%arg0: i32, %arg1: i32) -> (i32, i32, i32) {
    %c0_i32 = arith.constant 0 : i32
    %c0_i32_0 = arith.constant 0 : i32
    return %arg0, %arg1, %c0_i32 : i32, i32, i32
  }
  func.func @transform_1(%arg0: i32, %arg1: i32) -> (i32, i32) {
    %c0_i32 = arith.constant 0 : i32
    %c0_i32_0 = arith.constant 0 : i32
    %c0_i32_1 = arith.constant 0 : i32
    return %c0_i32, %c0_i32_0 : i32, i32
  }
  func.func @transform_2(%arg0: i32, %arg1: i32) -> (i32, i32) {
    %c0_i32 = arith.constant 0 : i32
    %c0_i32_0 = arith.constant 0 : i32
    %c0_i32_1 = arith.constant 0 : i32
    return %c0_i32, %c0_i32_0 : i32, i32
  }
  func.func @transform_3(%arg0: i32, %arg1: i32) -> (i32, i32) {
    %c0_i32 = arith.constant 0 : i32
    %c0_i32_0 = arith.constant 0 : i32
    %c0_i32_1 = arith.constant 0 : i32
    return %c0_i32, %c0_i32_0 : i32, i32
  }
  func.func @transform_4(%arg0: i32, %arg1: i32) -> (i32, i32, i32, i32) {
    %c0_i32 = arith.constant 0 : i32
    %c0_i32_0 = arith.constant 0 : i32
    %c0_i32_1 = arith.constant 0 : i32
    return %arg0, %c0_i32, %arg1, %c0_i32_0 : i32, i32, i32, i32
  }
  func.func @transform_5(%arg0: i32, %arg1: i32) -> (i32, i32, i32, i32) {
    %c0_i32 = arith.constant 0 : i32
    %c0_i32_0 = arith.constant 0 : i32
    %c0_i32_1 = arith.constant 0 : i32
    return %arg0, %c0_i32, %arg1, %c0_i32_0 : i32, i32, i32, i32
  }
  func.func @transform_6(%arg0: i32, %arg1: i32) -> (i32, i32, i32, i32) {
    %c0_i32 = arith.constant 0 : i32
    %c0_i32_0 = arith.constant 0 : i32
    %c0_i32_1 = arith.constant 0 : i32
    return %arg0, %c0_i32, %arg1, %c0_i32_0 : i32, i32, i32, i32
  }
}

module attributes {stable_mosaic.version = 11 : i64} {
  func.func @_qkv_proj_kernel(%arg0: i32, %arg1: i32, %arg2: memref<1x8x32xbf16, #tpu.memory_space<vmem>>, %arg3: memref<32x128xbf16, #tpu.memory_space<vmem>>, %arg4: memref<32x128xbf16, #tpu.memory_space<vmem>>, %arg5: memref<32x128xbf16, #tpu.memory_space<vmem>>, %arg6: memref<1x4x8x32xbf16, #tpu.memory_space<vmem>>, %arg7: memref<1x4x8x32xbf16, #tpu.memory_space<vmem>>, %arg8: memref<1x4x8x32xbf16, #tpu.memory_space<vmem>>) attributes {dimension_semantics = [#tpu.dimension_semantics<parallel>, #tpu.dimension_semantics<parallel>], iteration_bounds = array<i64: 2, 2>, scalar_prefetch = 0 : i64, scratch_operands = 0 : i64, tpu.core_type = #tpu.core_type<tc>, window_params = [{transform_indices = @transform_0, window_bounds = array<i64: 1, 8, 32>}, {pipeline_mode = #tpu.pipeline_mode<synchronous>, transform_indices = @transform_1, window_bounds = array<i64: 32, 128>}, {pipeline_mode = #tpu.pipeline_mode<synchronous>, transform_indices = @transform_2, window_bounds = array<i64: 32, 128>}, {pipeline_mode = #tpu.pipeline_mode<synchronous>, transform_indices = @transform_3, window_bounds = array<i64: 32, 128>}, {transform_indices = @transform_4, window_bounds = array<i64: 1, 4, 8, 32>}, {transform_indices = @transform_5, window_bounds = array<i64: 1, 4, 8, 32>}, {transform_indices = @transform_6, window_bounds = array<i64: 1, 4, 8, 32>}]} {
    %c0 = arith.constant 0 : index
    %c0_0 = arith.constant 0 : index
    %c0_1 = arith.constant 0 : index
    %0 = vector.load %arg2[%c0, %c0_0, %c0_1] : memref<1x8x32xbf16, #tpu.memory_space<vmem>>, vector<1x8x32xbf16>
    %1 = vector.shape_cast %0 : vector<1x8x32xbf16> to vector<8x32xbf16>
    %c0_2 = arith.constant 0 : index
    %c0_3 = arith.constant 0 : index
    %2 = vector.load %arg3[%c0_2, %c0_3] : memref<32x128xbf16, #tpu.memory_space<vmem>>, vector<32x128xbf16>
    %cst = arith.constant dense<0.000000e+00> : vector<8x128xf32>
    %3 = tpu.matmul %1, %2, %cst {dimension_numbers = #tpu.dot_dimension_numbers<[1], [0], [0], [1], [0, 0, 1, 1], [], []>} : vector<8x32xbf16>, vector<32x128xbf16>, vector<8x128xf32> -> vector<8x128xf32>
    %cst_4 = arith.constant 0.176776692 : f32
    %4 = vector.broadcast %cst_4 : f32 to vector<8x128xf32>
    %5 = arith.mulf %3, %4 : vector<8x128xf32>
    %6 = vector.shape_cast %5 : vector<8x128xf32> to vector<8x4x32xf32>
    %7 = tpu.transpose %6, [1, 0, 2] : vector<8x4x32xf32> -> vector<4x8x32xf32>
    %8 = arith.truncf %7 : vector<4x8x32xf32> to vector<4x8x32xbf16>
    %c0_5 = arith.constant 0 : index
    %c0_6 = arith.constant 0 : index
    %c0_7 = arith.constant 0 : index
    %c0_8 = arith.constant 0 : index
    %9 = vector.load %arg6[%c0_5, %c0_6, %c0_7, %c0_8] : memref<1x4x8x32xbf16, #tpu.memory_space<vmem>>, vector<1x4x8x32xbf16>
    %10 = vector.shape_cast %9 : vector<1x4x8x32xbf16> to vector<4x8x32xbf16>
    %11 = vector.shape_cast %8 : vector<4x8x32xbf16> to vector<1x4x8x32xbf16>
    tpu.vector_store %arg6[%c0_5, %c0_6, %c0_7, %c0_8], %11 {strides = array<i32>} : memref<1x4x8x32xbf16, #tpu.memory_space<vmem>>, vector<1x4x8x32xbf16>,
    %c0_9 = arith.constant 0 : index
    %c0_10 = arith.constant 0 : index
    %12 = vector.load %arg4[%c0_9, %c0_10] : memref<32x128xbf16, #tpu.memory_space<vmem>>, vector<32x128xbf16>
    %cst_11 = arith.constant dense<0.000000e+00> : vector<8x128xf32>
    %13 = tpu.matmul %1, %12, %cst_11 {dimension_numbers = #tpu.dot_dimension_numbers<[1], [0], [0], [1], [0, 0, 1, 1], [], []>} : vector<8x32xbf16>, vector<32x128xbf16>, vector<8x128xf32> -> vector<8x128xf32>
    %14 = vector.shape_cast %13 : vector<8x128xf32> to vector<8x4x32xf32>
    %15 = tpu.transpose %14, [1, 0, 2] : vector<8x4x32xf32> -> vector<4x8x32xf32>
    %16 = arith.truncf %15 : vector<4x8x32xf32> to vector<4x8x32xbf16>
    %c0_12 = arith.constant 0 : index
    %c0_13 = arith.constant 0 : index
    %c0_14 = arith.constant 0 : index
    %c0_15 = arith.constant 0 : index
    %17 = vector.load %arg7[%c0_12, %c0_13, %c0_14, %c0_15] : memref<1x4x8x32xbf16, #tpu.memory_space<vmem>>, vector<1x4x8x32xbf16>
    %18 = vector.shape_cast %17 : vector<1x4x8x32xbf16> to vector<4x8x32xbf16>
    %19 = vector.shape_cast %16 : vector<4x8x32xbf16> to vector<1x4x8x32xbf16>
    tpu.vector_store %arg7[%c0_12, %c0_13, %c0_14, %c0_15], %19 {strides = array<i32>} : memref<1x4x8x32xbf16, #tpu.memory_space<vmem>>, vector<1x4x8x32xbf16>,
    %c0_16 = arith.constant 0 : index
    %c0_17 = arith.constant 0 : index
    %20 = vector.load %arg5[%c0_16, %c0_17] : memref<32x128xbf16, #tpu.memory_space<vmem>>, vector<32x128xbf16>
    %cst_18 = arith.constant dense<0.000000e+00> : vector<8x128xf32>
    %21 = tpu.matmul %1, %20, %cst_18 {dimension_numbers = #tpu.dot_dimension_numbers<[1], [0], [0], [1], [0, 0, 1, 1], [], []>} : vector<8x32xbf16>, vector<32x128xbf16>, vector<8x128xf32> -> vector<8x128xf32>
    %22 = vector.shape_cast %21 : vector<8x128xf32> to vector<8x4x32xf32>
    %23 = tpu.transpose %22, [1, 0, 2] : vector<8x4x32xf32> -> vector<4x8x32xf32>
    %24 = arith.truncf %23 : vector<4x8x32xf32> to vector<4x8x32xbf16>
    %c0_19 = arith.constant 0 : index
    %c0_20 = arith.constant 0 : index
    %c0_21 = arith.constant 0 : index
    %c0_22 = arith.constant 0 : index
    %25 = vector.load %arg8[%c0_19, %c0_20, %c0_21, %c0_22] : memref<1x4x8x32xbf16, #tpu.memory_space<vmem>>, vector<1x4x8x32xbf16>
    %26 = vector.shape_cast %25 : vector<1x4x8x32xbf16> to vector<4x8x32xbf16>
    %27 = vector.shape_cast %24 : vector<4x8x32xbf16> to vector<1x4x8x32xbf16>
    tpu.vector_store %arg8[%c0_19, %c0_20, %c0_21, %c0_22], %27 {strides = array<i32>} : memref<1x4x8x32xbf16, #tpu.memory_space<vmem>>, vector<1x4x8x32xbf16>,
    return
  }
  func.func @transform_0(%arg0: i32, %arg1: i32) -> (i32, i32, i32) {
    %c0_i32 = arith.constant 0 : i32
    %c0_i32_0 = arith.constant 0 : i32
    return %arg0, %arg1, %c0_i32 : i32, i32, i32
  }
  func.func @transform_1(%arg0: i32, %arg1: i32) -> (i32, i32) {
    %c0_i32 = arith.constant 0 : i32
    %c0_i32_0 = arith.constant 0 : i32
    %c0_i32_1 = arith.constant 0 : i32
    return %c0_i32, %c0_i32_0 : i32, i32
  }
  func.func @transform_2(%arg0: i32, %arg1: i32) -> (i32, i32) {
    %c0_i32 = arith.constant 0 : i32
    %c0_i32_0 = arith.constant 0 : i32
    %c0_i32_1 = arith.constant 0 : i32
    return %c0_i32, %c0_i32_0 : i32, i32
  }
  func.func @transform_3(%arg0: i32, %arg1: i32) -> (i32, i32) {
    %c0_i32 = arith.constant 0 : i32
    %c0_i32_0 = arith.constant 0 : i32
    %c0_i32_1 = arith.constant 0 : i32
    return %c0_i32, %c0_i32_0 : i32, i32
  }
  func.func @transform_4(%arg0: i32, %arg1: i32) -> (i32, i32, i32, i32) {
    %c0_i32 = arith.constant 0 : i32
    %c0_i32_0 = arith.constant 0 : i32
    %c0_i32_1 = arith.constant 0 : i32
    return %arg0, %c0_i32, %arg1, %c0_i32_0 : i32, i32, i32, i32
  }
  func.func @transform_5(%arg0: i32, %arg1: i32) -> (i32, i32, i32, i32) {
    %c0_i32 = arith.constant 0 : i32
    %c0_i32_0 = arith.constant 0 : i32
    %c0_i32_1 = arith.constant 0 : i32
    return %arg0, %c0_i32, %arg1, %c0_i32_0 : i32, i32, i32, i32
  }
  func.func @transform_6(%arg0: i32, %arg1: i32) -> (i32, i32, i32, i32) {
    %c0_i32 = arith.constant 0 : i32
    %c0_i32_0 = arith.constant 0 : i32
    %c0_i32_1 = arith.constant 0 : i32
    return %arg0, %c0_i32, %arg1, %c0_i32_0 : i32, i32, i32, i32
  }
}

</mosaic_0001>

<bundles_post_ra>
// kernel: tpu_custom_call.1
= control target key start
LH: loop header
LB: loop body
LE: loop exit
PB: predicated region body
PF: predicated region fallthrough
CT: control target
= control target key end

     0   :  { %s2057_s0 = inlined_call_operand.hbm [shape: bf16[2,16,32], index: 0, kind: input, shape index: {}]   ;;  %s2058_s1 = inlined_call_operand.hbm [shape: bf16[32,128], index: 1, kind: input, shape index: {}]   ;;  %s2059_s2 = inlined_call_operand.hbm [shape: bf16[32,128], index: 2, kind: input, shape index: {}]   ;;  %s2060_s3 = inlined_call_operand.hbm [shape: bf16[32,128], index: 3, kind: input, shape index: {}]   ;;  %s2061_s4 = inlined_call_operand.hbm [shape: bf16[2,4,16,32], index: 4, kind: output, shape index: {0}]   ;;  %s2062_s5 = inlined_call_operand.hbm [shape: bf16[2,4,16,32], index: 5, kind: output, shape index: {1}]   ;;  %s2063_s6 = inlined_call_operand.hbm [shape: bf16[2,4,16,32], index: 6, kind: output, shape index: {2}]  }
   0x1   :  { %2070 = sst [smem:[#allocation23_spill]] %s2058_s1 }
   0x2   :  { %2071 = sst [smem:[#allocation24_spill]] %s2059_s2 }
   0x3   :  { %2072 = sst [smem:[#allocation25_spill]] %s2060_s3 }
   0x4   :  { %2073 = sst [smem:[#allocation26_spill]] %s2063_s6 }
   0x5   :  { %12 = vsyncpa [#allocation3], 0 }
   0x6   :  { %14 = vsyncpa [#allocation3 + $0x1], 0 }
   0x7   :  { %15 = vsyncpa [#allocation6], 0 }
   0x8   :  { %16 = vsyncpa [#allocation9], 0 }
   0x9   :  { %17 = vsyncpa [#allocation4], 0 }
   0xa   :  { %19 = vsyncpa [#allocation4 + $0x1], 0 }
   0xb   :  { %20 = vsyncpa [#allocation12], 0 }
   0xc   :  { %22 = vsyncpa [#allocation12 + $0x1], 0  ;;  %s1626_s21 = smov 0   ;;  %s1628_s22 = smov 0  }
   0xd   :  { %s1630_s23 = smov 0   ;;  %s1632_s24 = smov 0  }
   0xe   :  { %s1634_s25 = smov 0   ;;  %s1636_s26 = smov 0  }
   0xf   :  { %s1638_s27 = smov 0   ;;  %s1640_s28 = smov 0  }
  0x10 LB: > { %2074 = sst [smem:[#allocation19_spill]] %s1549_s21  ;;  %s1667_s29 = sadd.s32 4294967295, %s1577_s28   ;;  %s1577_s28 = sphi %s1640_s28, %s28_s28   ;;  %s1573_s27 = sphi %s1638_s27, %s2099_s27   ;;  %s1569_s26 = sphi %s1636_s26, %s2098_s26   ;;  %s1565_s25 = sphi %s1634_s25, %s2097_s25   ;;  %s1561_s24 = sphi %s1632_s24, %s2096_s24   ;;  %s1557_s23 = sphi %s1630_s23, %s2095_s23   ;;  %s1553_s22 = sphi %s1628_s22, %s2094_s22   ;;  %s1549_s21 = sphi %s1626_s21, %s2093_s21  }
  0x11   : > { %p1088_p0 = scmp.ge.s32.totalorder %s1577_s28, 1  ;;  %p63_p1 = scmp.eq.s32.totalorder %s1667_s29, 0 }
  0x12   : > { %p220_p2 = scmp.lt.s32.totalorder %s1577_s28, 5  ;;  %s2075_s1 = sld [smem:[#allocation23_spill]] }
  0x13   : > { %s1579_s10 = smov [#allocation5]   ;;  %s2078_s2 = sld [smem:[#allocation24_spill]] }
  0x14   : > { %p1675_p3 = pnand %p1088_p0, %p220_p2  ;;  %s233_s11 = sshll.u32 %s1579_s10, 4  ;;  %s234_s11 = int_to_ptr.vmem [resolvable:$true] %s233_s11 }
  0x15   : > { %s1580_s16 = smov 64   ;;  %s1581_s17 = smov 4  }
  0x16   : > { %p1168_p4 = pneg %p1675_p3  ;;  %s1582_s18 = smov [#allocation7]  }
  0x17   : > { %s247_s19 = sshll.u32 %s1582_s18, 4  ;;  %s2079_s3 = sld [smem:[#allocation25_spill]]  ;;  %s248_s19 = int_to_ptr.vmem [resolvable:$true] %s247_s19 }
  0x18   : > { %s231_s8 = sshll.u32 %s2075_s1, 4  ;;  %p1683_p5 = pnand %p1168_p4, %p63_p1  ;;  %s232_s8 = int_to_ptr.hbm [resolvable:$true] %s231_s8 }
  0x19   : > { %s245_s15 = sshll.u32 %s2078_s2, 4  ;;  %s1583_s10 = smov [#allocation8]   ;;  %s246_s15 = int_to_ptr.hbm [resolvable:$true] %s245_s15 }
  0x1a   : > { %1171 = dma.hbm_to_vmem [thread:$0]  (!%p1683_p5), %s232_s8, 256, %s234_s11, [#allocation6], %s1580_s16, %s1580_s16, %s1581_s17  }
  0x1b   : > { %1174 = dma.hbm_to_vmem [thread:$0]  (!%p1683_p5), %s246_s15, 256, %s248_s19, [#allocation6], %s1580_s16, %s1580_s16, %s1581_s17  }
  0x1c   : > { %s261_s13 = sshll.u32 %s1583_s10, 4  ;;  %s2064_s8 = sadd.s32 4294967294, %s1577_s28   ;;  %s262_s13 = int_to_ptr.vmem [resolvable:$true] %s261_s13 }
  0x1d   : > { %s259_s7 = sshll.u32 %s2079_s3, 4  ;;  %s37_s11 = sadd.s32 1, %s1569_s26  ;;  %s260_s7 = int_to_ptr.hbm [resolvable:$true] %s259_s7 }
  0x1e   : > { %1177 = dma.hbm_to_vmem [thread:$0]  (!%p1683_p5), %s260_s7, 256, %s262_s13, [#allocation9], %s1580_s16, %s1580_s16, %s1581_s17  }
  0x1f   : > { %s40_s14 = sadd.s32 1, %s1573_s27  ;;  %p38_p6 = scmp.ge.s32.totalorder %s37_s11, 2 }
  0x20   : > { %s49_s18 = sadd.s32 1, %s1557_s23  ;;  %p56_p7 = scmp.ne.s32.totalorder %s1557_s23, %s1553_s22 }
  0x21   : > { %p57_p8 = scmp.eq.s32.totalorder %s1577_s28, 0  ;;  %s2101_s11 = smov (%p38_p6, %s37_s11), 0 }
  0x22   : > { %2080 = sst [smem:[#allocation20_spill]] %s2101_s11  ;;  %s2103_s14 = smov (!%p38_p6, %s40_s14), %s1573_s27 }
  0x23   : > { %s45_s15 = ssub.s32 %s1569_s26, %s2101_s11  ;;  %p1711_p9 = por %p57_p8, %p56_p7 }
  0x24   : > { %p42_p10 = scmp.ge.s32.totalorder %s2103_s14, 2  ;;  %p62_p11 = scmp.ne.s32.totalorder %s1553_s22, %s1549_s21 }
  0x25   : > { %p151_p12 = scmp.eq.s32.totalorder %s1667_s29, 3  ;;  %p157_p13 = scmp.eq.s32.totalorder %s2064_s8, 3 }
  0x26   : > { %s2105_s14 = smov (%p42_p10, %s2103_s14), 0  ;;  %p1724_p0 = por %p63_p1, %p62_p11 }
  0x27   : > { %2082 = sst [smem:[#allocation21_spill]] %s2105_s14  ;;  %p1728_p2 = por %p151_p12, %p56_p7 }
  0x28   : > { %s44_s19 = ssub.s32 %s1573_s27, %s2105_s14  ;;  %p1734_p4 = por %p157_p13, %p62_p11 }
  0x29   : > { %s46_s30 = sor.u32 %s45_s15, %s44_s19  ;;  %p1195_p5 = scmp.lt.s32.totalorder %s1577_s28, 4 }
  0x2a   : > { %s2085_s20 = scalar_select %p1734_p4, 1, 0 }
  0x2b   : > { %p47_p6 = scmp.eq.s32.totalorder %s46_s30, 0  ;;  %s275_s7 = sand.u32 1, %s1557_s23  }
  0x2c   : > { %2086 = sst [smem:[#allocation22_spill]] %s2085_s20  ;;  %s1093_s10 = sshll.u32 %s275_s7, 2 }
  0x2d   : > { %s1741_s13 = scalar_select %p47_p6, %s1557_s23, %s49_s18  }
  0x2e   : > { %s1094_s8 = sshll.u32 %s1573_s27, 1  ;;  %s279_s2 = scalar_lea.vmem [#allocation2], %s1093_s10 }
  0x2f   : > { %s283_s1 = sadd.s32 %s1569_s26, %s1094_s8  ;;  %s289_s3 = sshll.u32 %s279_s2, 4  ;;  %s290_s3 = int_to_ptr.vmem [resolvable:$true] %s289_s3 }
  0x30   : > { %s1095_s11 = sshll.u32 %s283_s1, 2  ;;  %p1179_p7 = pnand %p1195_p5, %p1711_p9 }
  0x31   : > { %s285_s14 = scalar_lea.hbm %s2057_s0, %s1095_s11  ;;  %s276_s15 = scalar_lea.sflag [#allocation3], %s275_s7 }
  0x32   : > { %s287_s20 = sshll.u32 %s285_s14, 4  ;;  %298 = sbr.rel (%p1675_p3) target bundleno = 389 (0x185), region = 36  ;;  %s288_s20 = int_to_ptr.hbm [resolvable:$true] %s287_s20 }
  0x33   : > { %1181 = dma.hbm_to_vmem [thread:$0]  (!%p1179_p7), %s288_s20, 64, %s290_s3, %s276_s15  }
  0x34   : > { %s1753_s8 = sand.u32 (!%p1675_p3), 1, %s1553_s22  }
  0x35   : > { %s1097_s1 = sshll.u32 (!%p1675_p3), %s1753_s8, 2  ;;  %s301_s2 = scalar_lea.sflag (!%p1675_p3), [#allocation3], %s1753_s8 }
  0x36   : > { %s304_s18 = scalar_lea.vmem (!%p1675_p3), [#allocation2], %s1097_s1 }
  0x37   : > { %1528 = dma.done.wait (%p1724_p0), %s301_s2, 64  }
  0x38   : > { %1530 = vsyncadd (%p1724_p0), %s301_s2, 4294967232 }
  0x39   : > { %1532 = dma.done.wait (%p63_p1), [#allocation6], 512  }
  0x3a   : > { %1534 = vsyncadd (%p63_p1), [#allocation6], 4294966784 }
  0x3b   : > { %1536 = dma.done.wait (%p63_p1), [#allocation9], 256  }
  0x3c   : > { %1538 = vsyncadd (%p63_p1), [#allocation9], 4294967040  ;;  %v1143_v0 = vld [vmem:[#allocation5 + $0x8] sm:$0xff]  ;;  %v1145_v1 = vld [vmem:[#allocation7 + $0x8] sm:$0xff]  ;;  %vm377_vm0 = vcmask 261120   ;;  %s1584_s3 = smov 96  }
  0x3d   : > { %v1147_v2 = vld [vmem:[#allocation8 + $0x8] sm:$0xff]  ;;  %387 = vmatpush.bf16.msra.mxu0 %v1143_v0  ;;  %547 = vmatpush.bf16.msra.mxu1 %v1145_v1  ;;  %v1142_v3 = vld [vmem:[#allocation5] sm:$0xff]  ;;  %v1144_v4 = vld [vmem:[#allocation7] sm:$0xff]  ;;  %s1585_s6 = smov 64   ;;  %s1586_s21 = smov 32   ;;  %vm406_vm1 = vcmask 1047556  }
  0x3e   : > { %704 = vmatpush.bf16.msra.mxu2 %v1147_v2  ;;  %v1146_v5 = vld [vmem:[#allocation8] sm:$0xff]  ;;  %v360_v6 = vld [vmem:[%s304_s18] sm:$0xf]  ;;  %v1587_v17 = vmov 1983009808   ;;  %s1134_s9 = sshll.u32 %s1565_s25, 3 }
  0x3f   : > { %v411_v18 = vunpack.c.l.s4 %v1587_v17  ;;  %v1588_v33 = vmov 1934713408   ;;  %vm520_vm2 = vcmask 257024   ;;  %s860_s25 = sadd.s32 %s1561_s24, %s1134_s9  ;;  %s1864_s11 = sshll.u32 %s1753_s8, 4 }
  0x40   : > { %v435_v34 = vunpack.c.l.s4 %v1588_v33  ;;  %s1854_s24 = sshll.u32 %s860_s25, 2  ;;  %s344_s19 = scalar_lea.vmem [#allocation10], %s1864_s11 }
  0x41   : > { %388 = vmatpush.bf16.msra.mxu0 %v1142_v3  ;;  %548 = vmatpush.bf16.msra.mxu1 %v1144_v4  ;;  %v1776_v21 = vunpack.c.0.s8 %v411_v18  ;;  %s862_s16 = scalar_lea.hbm %s2061_s4, %s1854_s24  ;;  %s863_s20 = sshll.u32 %s344_s19, 4  ;;  %s1893_s20 = int_to_ptr.vmem [resolvable:$true] %s863_s20 }
  0x42   : > { %705 = vmatpush.bf16.msra.mxu2 %v1146_v5  ;;  %v1793_v45 = vunpack.c.0.s8 %v435_v34  ;;  %s1880_s30 = sshll.u32 %s862_s16, 4  ;;  %s840_s7 = scalar_lea.sflag [#allocation4], %s1753_s8  ;;  %s866_s30 = int_to_ptr.hbm [resolvable:$true] %s1880_s30 }
  0x43   : > { %s1425_s10 = sshra.s32 %s866_s30, 4  ;;  %s1431_s18 = scalar_lea.hbm %s2061_s4, 64  ;;  %s1426_s10 = int_to_ptr.hbm [resolvable:$true] %s1425_s10 }
  0x44   : > { %1112 = vmatmul.msk.bf16.vlgmr.msra.gmra.mxu0 %vm377_vm0, %v360_v6  ;;  %1121 = vmatmul.msk.bf16.vlgmr.msra.gmra.mxu1 %vm377_vm0, %v360_v6  ;;  %s1427_s15 = scalar_lea.hbm %s1426_s10, 16  ;;  %p1432_p9 = scmp.lt.s32.totalorder %s1426_s10, %s2061_s4 }
  0x45   : > { %1130 = vmatmul.msk.bf16.vlgmr.msra.gmra.mxu2 %vm377_vm0, %v360_v6  ;;  %p1428_p1 = scmp.ne.s32.totalorder %s1426_s10, %s1427_s15  ;;  %p1433_p10 = scmp.lt.s32.totalorder %s1431_s18, %s1427_s15 }
  0x47   : > { %p1429_p3 = pnand %p1428_p1, %p1728_p2  ;;  %p1434_p11 = por %p1433_p10, %p1432_p9 }
  0x49   : > { %p1430_p8 = pneg %p1429_p3 }
  0x4b   : > { %p1435_p12 = pnand %p1434_p11, %p1430_p8 }
  0xc1   : > { %v390_v7 = vpop.f32.mrf.mxu0  ;;  %v550_v8 = vpop.f32.mrf.mxu1 }
  0xc2   : > { %v394_v9 = vmul.f32 0.17677669, %v390_v7  ;;  %v566_v29 = vrot.slane %v550_v8, 4 }
  0xc4   : > { %v1281_v10 = vpack.i.bf16 %v394_v9, %v550_v8  ;;  %v408_v28 = vrot.slane %v394_v9, 4 }
  0xc6   : > { %1282 = vrot.lane.b32.xlu1 %v1281_v10, %s1584_s3  ;;  %1277 = vrot.lane.b32.xlu0 %v1281_v10, %s1585_s6 }
  0xc8   : > { %v1770_v11 = vpop.f32.mrf.mxu2 }
  0xc9   : > { %712 = vrot.lane.b32.xlu2 %v1770_v11, %s1584_s3  ;;  %v392_v12 = vpop.f32.mrf.mxu0  ;;  %v552_v13 = vpop.f32.mrf.mxu1  ;;  %v723_v46 = vrot.slane %v1770_v11, 4 }
  0xce   : > { %1287 = vrot.lane.b32.xlu1 %v1281_v10, %s1586_s21  ;;  %715 = vrot.lane.b32.xlu0 %v1770_v11, %s1585_s6 }
  0xd0   : > { %v709_v14 = vpop.f32.mrf.mxu2 }
  0xd1   : > { %718 = vrot.lane.b32.xlu2 %v1770_v11, %s1586_s21 }
 0x123   : > { %v713_v15 = vpop.permute.xlu2 %712 }
 0x124   : > { %v735_v19 = vrot.slane %v713_v15, 4 }
 0x12b   : > { %v719_v16 = vpop.permute.xlu2 %718 }
 0x12c   : > { %v733_v20 = vrot.slane %v719_v16, 4  ;;  %v736_v22 = vsel %vm406_vm1, %v719_v16, %v735_v19 }
 0x12d   : > { %v1781_v30 = vperm.slane %v736_v22, %v1776_v21 }
 0x12e   : > { %v734_v25 = vsel %vm406_vm1, %v733_v20, %v713_v15 }
 0x12f   : > { %v1785_v35 = vperm.slane %v734_v25, %v1776_v21  ;;  %v757_v48 = vrot.slane %v1781_v30, 4 }
 0x131   : > { %v745_v47 = vrot.slane %v1785_v35, 4 }
 0x138   : > { %v1283_v23 = vpop.permute.xlu1 %1282  ;;  %v1278_v24 = vpop.permute.xlu0 %1277 }
 0x139   : > { %v1280_v26 = vunpack.i.h.bf16 %v1278_v24  ;;  %v1279_v27 = vunpack.i.l.bf16 %v1278_v24  ;;  %v1285_v36 = vunpack.i.h.bf16 %v1283_v23  ;;  %v1284_v39 = vunpack.i.l.bf16 %v1283_v23 }
 0x13b   : > { %v405_v31 = vrot.slane %v1280_v26, 4  ;;  %v409_v32 = vsel %vm406_vm1, %v1280_v26, %v408_v28  ;;  %v564_v37 = vrot.slane %v1279_v27, 4  ;;  %v567_v38 = vsel %vm406_vm1, %v1279_v27, %v566_v29 }
 0x13c   : > { %v417_v42 = vperm.slane %v409_v32, %v1776_v21  ;;  %v575_v44 = vperm.slane %v567_v38, %v1776_v21  ;;  %v420_v49 = vrot.slane %v1285_v36, 4  ;;  %v578_v53 = vrot.slane %v1284_v39, 4 }
 0x13d   : > { %v407_v40 = vsel %vm406_vm1, %v405_v31, %v394_v9  ;;  %v565_v43 = vsel %vm406_vm1, %v564_v37, %v550_v8 }
 0x13e   : > { %v413_v41 = vperm.slane %v407_v40, %v1776_v21  ;;  %v571_v50 = vperm.slane %v565_v43, %v1776_v21  ;;  %v444_v58 = vrot.slane %v417_v42, 4  ;;  %v602_v59 = vrot.slane %v575_v44, 4 }
 0x140   : > { %v1288_v51 = vpop.permute.xlu1 %1287  ;;  %v716_v52 = vpop.permute.xlu0 %715  ;;  %v432_v57 = vrot.slane %v413_v41, 4  ;;  %v590_v1 = vrot.slane %v571_v50, 4 }
 0x141   : > { %v1290_v54 = vunpack.i.h.bf16 %v1288_v51  ;;  %v1289_v55 = vunpack.i.l.bf16 %v1288_v51  ;;  %v721_v56 = vrot.slane %v716_v52, 4  ;;  %v724_v60 = vsel %vm406_vm1, %v716_v52, %v723_v46 }
 0x142   : > { %v1812_v8 = vperm.slane %v724_v60, %v1776_v21 }
 0x143   : > { %v418_v61 = vrot.slane %v1290_v54, 4  ;;  %v421_v62 = vsel %vm406_vm1, %v1290_v54, %v420_v49  ;;  %v576_v63 = vrot.slane %v1289_v55, 4  ;;  %v579_v0 = vsel %vm406_vm1, %v1289_v55, %v578_v53 }
 0x144   : > { %v429_v2 = vperm.slane %v421_v62, %v1776_v21  ;;  %v587_v3 = vperm.slane %v579_v0, %v1776_v21  ;;  %v722_v4 = vsel %vm406_vm1, %v721_v56, %v1770_v11 }
 0x145   : > { %v419_v5 = vsel %vm406_vm1, %v418_v61, %v1285_v36  ;;  %v577_v6 = vsel %vm406_vm1, %v576_v63, %v1284_v39  ;;  %v1809_v7 = vperm.slane %v722_v4, %v1776_v21 }
 0x146   : > { %v425_v9 = vperm.slane %v419_v5, %v1776_v21  ;;  %v442_v10 = vrot.slane %v429_v2, 4  ;;  %v445_v12 = vsel %vm406_vm1, %v429_v2, %v444_v58  ;;  %v583_v13 = vperm.slane %v577_v6, %v1776_v21 }
 0x147   : > { %v453_v14 = vperm.slane %v445_v12, %v1793_v45  ;;  %v600_v11 = vrot.slane %v587_v3, 4  ;;  %v603_v15 = vsel %vm406_vm1, %v587_v3, %v602_v59  ;;  %v1821_v16 = vsel %vm406_vm1, %v745_v47, %v1809_v7 }
 0x148   : > { %v430_v17 = vrot.slane %v425_v9, 4  ;;  %v433_v18 = vsel %vm406_vm1, %v425_v9, %v432_v57  ;;  %v443_v19 = vsel %vm406_vm1, %v442_v10, %v417_v42  ;;  %v588_v20 = vrot.slane %v583_v13, 4 }
 0x149   : > { %v441_v22 = vperm.slane %v433_v18, %v1793_v45  ;;  %v449_v23 = vperm.slane %v443_v19, %v1793_v45  ;;  %v460_v24 = vrot.slane %v453_v14, 4  ;;  %v591_v25 = vsel %vm406_vm1, %v583_v13, %v590_v1 }
 0x14a   : > { %v431_v26 = vsel %vm406_vm1, %v430_v17, %v413_v41  ;;  %v589_v27 = vsel %vm406_vm1, %v588_v20, %v571_v50  ;;  %v599_v28 = vperm.slane %v591_v25, %v1793_v45  ;;  %v601_v29 = vsel %vm406_vm1, %v600_v11, %v575_v44 }
 0x14b   : > { %v437_v31 = vperm.slane %v431_v26, %v1793_v45  ;;  %v456_v32 = vrot.slane %v441_v22, 4  ;;  %v458_v33 = vrot.slane %v449_v23, 4  ;;  %v461_v34 = vsel %vm406_vm1, 0.0, %v460_v24 }
 0x14c   : > { %v473_v36 = vsel %vm406_vm1, %v460_v24, %v449_v23  ;;  %v478_v37 = vrot.slane %v461_v34, 4  ;;  %v595_v38 = vperm.slane %v589_v27, %v1793_v45  ;;  %v607_v39 = vperm.slane %v601_v29, %v1793_v45 }
 0x14d   : > { %v454_v40 = vrot.slane %v437_v31, 4  ;;  %v457_v41 = vsel %vm406_vm1, 0.0, %v456_v32  ;;  %v459_v42 = vsel %vm406_vm1, 0.0, %v458_v33  ;;  %v462_v43 = vsel %vm406_vm1, %v456_v32, %v437_v31 }
 0x14e   : > { %v466_v44 = vperm.slane %v462_v43, %v1776_v21  ;;  %v467_v46 = vrot.slane %v457_v41, 4  ;;  %v477_v47 = vperm.slane %v473_v36, %v1776_v21  ;;  %v479_v49 = vsel %vm406_vm1, %v478_v37, %v459_v42 }
 0x14f   : > { %v455_v50 = vsel %vm406_vm1, 0.0, %v454_v40  ;;  %v483_v51 = vperm.slane %v479_v49, %v1776_v21  ;;  %v611_v52 = vperm.slane %v603_v15, %v1793_v45  ;;  %v612_v53 = vrot.slane %v595_v38, 4 }
 0x150   : > { %v468_v54 = vsel %vm406_vm1, %v467_v46, %v455_v50  ;;  %v486_v55 = vrot.slane %v466_v44, 4  ;;  %v498_v56 = vrot.slane %v477_v47, 4  ;;  %v614_v57 = vrot.slane %v599_v28, 4 }
 0x151   : > { %v472_v58 = vperm.slane %v468_v54, %v1776_v21  ;;  %v496_v59 = vrot.slane %v483_v51, 4  ;;  %v613_v60 = vsel %vm406_vm1, 0.0, %v612_v53  ;;  %v616_v61 = vrot.slane %v607_v39, 4 }
 0x152   : > { %v499_v62 = vsel %vm406_vm1, %v483_v51, %v498_v56  ;;  %v615_v63 = vsel %vm406_vm1, 0.0, %v614_v57  ;;  %v618_v0 = vrot.slane %v611_v52, 4  ;;  %v620_v1 = vsel %vm406_vm1, %v614_v57, %v595_v38 }
 0x153   : > { %v484_v2 = vrot.slane %v472_v58, 4  ;;  %v487_v3 = vsel %vm406_vm1, %v472_v58, %v486_v55  ;;  %v497_v4 = vsel %vm406_vm1, %v496_v59, %v477_v47  ;;  %v507_v5 = vperm.slane %v499_v62, %v1793_v45 }
 0x154   : > { %v495_v6 = vperm.slane %v487_v3, %v1793_v45  ;;  %v503_v9 = vperm.slane %v497_v4, %v1793_v45  ;;  %v617_v10 = vsel %vm406_vm1, 0.0, %v616_v61  ;;  %v619_v12 = vsel %vm406_vm1, 0.0, %v618_v0 }
 0x155   : > { %v485_v13 = vsel %vm406_vm1, %v484_v2, %v466_v44  ;;  %v512_v14 = vrot.slane %v507_v5, 4  ;;  %v624_v11 = vperm.slane %v620_v1, %v1776_v21  ;;  %v625_v15 = vrot.slane %v615_v63, 4 }
 0x156   : > { %v491_v17 = vperm.slane %v485_v13, %v1793_v45  ;;  %v508_v18 = vrot.slane %v503_v9, 4  ;;  %v514_v19 = vrot.slane %v495_v6, 4  ;;  %v631_v20 = vsel %vm406_vm1, %v618_v0, %v607_v39 }
 0x157   : > { %v513_v22 = vsel %vm406_vm1, %v512_v14, %v495_v6  ;;  %v626_v23 = vsel %vm406_vm1, %v625_v15, %v613_v60  ;;  %v635_v24 = vperm.slane %v631_v20, %v1776_v21  ;;  %v636_v25 = vrot.slane %v619_v12, 4 }
 0x158   : > { %v509_v26 = vsel %vm406_vm1, %v508_v18, %v491_v17  ;;  %v510_v27 = vrot.slane %v491_v17, 4  ;;  %v515_v28 = vsel %vm406_vm1, %v507_v5, %v514_v19  ;;  %v518_v29 = vpack.c.bf16 %v513_v22, %v513_v22 }
 0x159   : > { %v516_v31 = vpack.c.bf16 %v509_v26, %v509_v26  ;;  %v519_v32 = vpack.c.bf16 %v515_v28, %v515_v28  ;;  %v630_v33 = vperm.slane %v626_v23, %v1776_v21  ;;  %v637_v34 = vsel %vm406_vm1, %v636_v25, %v617_v10 }
 0x15a   : > { %v511_v36 = vsel %vm406_vm1, %v503_v9, %v510_v27  ;;  %v641_v37 = vperm.slane %v637_v34, %v1776_v21  ;;  %v644_v38 = vrot.slane %v624_v11, 4  ;;  %v656_v39 = vrot.slane %v635_v24, 4  ;;  %523 = vst.msk [vmem:[%s344_s19 + $0x8] sm:$0xf] %vm520_vm2, %v518_v29 }
 0x15b   : > { %v517_v40 = vpack.c.bf16 %v511_v36, %v511_v36  ;;  %v642_v41 = vrot.slane %v630_v33, 4  ;;  %v747_v42 = vrot.slane %v1809_v7, 4  ;;  %v1890_v43 = vperm.slane %v1821_v16, %v1793_v45  ;;  %521 = vst.msk [vmem:[%s344_s19] sm:$0xf] %vm520_vm2, %v516_v31 }
 0x15c   : > { %v645_v44 = vsel %vm406_vm1, %v630_v33, %v644_v38  ;;  %v654_v46 = vrot.slane %v641_v37, 4  ;;  %v657_v47 = vsel %vm406_vm1, %v641_v37, %v656_v39  ;;  %v758_v7 = vsel %vm406_vm1, %v757_v48, %v1812_v8  ;;  %524 = vst.msk [vmem:[%s344_s19 + $0xc] sm:$0xf] %vm520_vm2, %v519_v32 }
 0x15d   : > { %v643_v16 = vsel %vm406_vm1, %v642_v41, %v624_v11  ;;  %v653_v49 = vperm.slane %v645_v44, %v1793_v45  ;;  %v665_v50 = vperm.slane %v657_v47, %v1793_v45  ;;  %v748_v51 = vsel %vm406_vm1, %v1785_v35, %v747_v42  ;;  %522 = vst.msk [vmem:[%s344_s19 + $0x4] sm:$0xf] %vm520_vm2, %v517_v40 }
 0x15e   : > { %v649_v52 = vperm.slane %v643_v16, %v1793_v45  ;;  %v655_v53 = vsel %vm406_vm1, %v654_v46, %v635_v24  ;;  %v756_v48 = vperm.slane %v748_v51, %v1793_v45  ;;  %v759_v54 = vrot.slane %v1812_v8, 4 }
 0x15f   : > { %1438 = shalt.err (!%p1435_p12)
}
 0x160   : > { %s1589_s8 = smov 128   ;;  %s1590_s9 = smov 4   ;;  %v661_v35 = vperm.slane %v655_v53, %v1793_v45  ;;  %v670_v8 = vrot.slane %v665_v50, 4  ;;  %v672_v55 = vrot.slane %v653_v49, 4  ;;  %v764_v56 = vperm.slane %v758_v7, %v1793_v45 }
 0x161   : > { %1162 = dma.vmem_to_hbm [thread:$0]  (%p1728_p2), %s1893_s20, 256, %s866_s30, %s840_s7, %s1585_s6, %s1589_s8, %s1590_s9   ;;  %v668_v57 = vrot.slane %v649_v52, 4  ;;  %v760_v58 = vsel %vm406_vm1, %v1781_v30, %v759_v54  ;;  %v769_v59 = vrot.slane %v1890_v43, 4  ;;  %v771_v60 = vrot.slane %v756_v48, 4 }
 0x162   : > { %s880_s12 = scalar_lea.hbm %s2062_s5, %s1854_s24  ;;  %v666_v61 = vrot.slane %v661_v35, 4  ;;  %v671_v62 = vsel %vm406_vm1, %v670_v8, %v653_v49  ;;  %v673_v63 = vsel %vm406_vm1, %v665_v50, %v672_v55  ;;  %v768_v0 = vperm.slane %v760_v58, %v1793_v45  ;;  %s844_s16 = sand.u32 1, %s1667_s29  }
 0x163   : > { %v669_v1 = vsel %vm406_vm1, %v661_v35, %v668_v57  ;;  %v676_v2 = vpack.c.bf16 %v671_v62, %v671_v62  ;;  %v677_v3 = vpack.c.bf16 %v673_v63, %v673_v63  ;;  %s351_s19 = scalar_lea.vmem [#allocation11], %s1864_s11  ;;  %s1947_s30 = sshll.u32 %s880_s12, 4  ;;  %v772_v5 = vsel %vm406_vm1, 0.0, %v771_v60  ;;  %s884_s30 = int_to_ptr.hbm [resolvable:$true] %s1947_s30 }
 0x164   : > { %s881_s20 = sshll.u32 %s351_s19, 4  ;;  %v667_v30 = vsel %vm406_vm1, %v666_v61, %v649_v52  ;;  %v675_v4 = vpack.c.bf16 %v669_v1, %v669_v1  ;;  %v773_v6 = vrot.slane %v764_v56, 4  ;;  %v775_v10 = vrot.slane %v768_v0, 4  ;;  %s1970_s7 = scalar_lea.sflag [#allocation12], %s844_s16  ;;  %s1957_s20 = int_to_ptr.vmem [resolvable:$true] %s881_s20 }
 0x165   : > { %v674_v9 = vpack.c.bf16 %v667_v30, %v667_v30  ;;  %v777_v12 = vsel %vm406_vm1, %v771_v60, %v1890_v43  ;;  %v782_v13 = vrot.slane %v772_v5, 4  ;;  %680 = vst.msk [vmem:[%s351_s19 + $0x8] sm:$0xf] %vm520_vm2, %v676_v2  ;;  %v770_v14 = vsel %vm406_vm1, 0.0, %v769_v59  ;;  %s1453_s10 = sshra.s32 %s884_s30, 4  ;;  %s1459_s18 = scalar_lea.hbm %s2062_s5, 64  ;;  %s1454_s10 = int_to_ptr.hbm [resolvable:$true] %s1453_s10 }
 0x166   : > { %v781_v11 = vperm.slane %v777_v12, %v1776_v21  ;;  %679 = vst.msk [vmem:[%s351_s19 + $0x4] sm:$0xf] %vm520_vm2, %v675_v4  ;;  %v776_v15 = vsel %vm406_vm1, 0.0, %v775_v10  ;;  %v788_v18 = vsel %vm406_vm1, %v775_v10, %v764_v56  ;;  %v774_v24 = vsel %vm406_vm1, 0.0, %v773_v6  ;;  %s1455_s15 = scalar_lea.hbm %s1454_s10, 16  ;;  %p1460_p6 = scmp.lt.s32.totalorder %s1454_s10, %s2062_s5 }
 0x167   : > { %v783_v17 = vsel %vm406_vm1, %v782_v13, %v770_v14  ;;  %678 = vst.msk [vmem:[%s351_s19] sm:$0xf] %vm520_vm2, %v674_v9  ;;  %v792_v20 = vperm.slane %v788_v18, %v1776_v21  ;;  %v793_v22 = vrot.slane %v776_v15, 4  ;;  %p1456_p13 = scmp.ne.s32.totalorder %s1454_s10, %s1455_s15  ;;  %p1461_p7 = scmp.lt.s32.totalorder %s1459_s18, %s1455_s15 }
 0x168   : > { %v787_v19 = vperm.slane %v783_v17, %v1776_v21  ;;  %v801_v23 = vrot.slane %v781_v11, 4  ;;  %681 = vst.msk [vmem:[%s351_s19 + $0xc] sm:$0xf] %vm520_vm2, %v677_v3 }
 0x169   : > { %p1457_p0 = pnand %p1456_p13, %p1728_p2  ;;  %p1462_p1 = por %p1461_p7, %p1460_p6 }
 0x16b   : > { %p1458_p5 = pneg %p1457_p0 }
 0x16d   : > { %p1463_p3 = pnand %p1462_p1, %p1458_p5 }
 0x16f   : > { %1466 = shalt.err (!%p1463_p3)
}
 0x170   : > { %1163 = dma.vmem_to_hbm [thread:$0]  (%p1728_p2), %s1957_s20, 256, %s884_s30, %s1970_s7, %s1585_s6, %s1589_s8, %s1590_s9   ;;  %v794_v25 = vsel %vm406_vm1, %v793_v22, %v774_v24  ;;  %v799_v26 = vrot.slane %v787_v19, 4  ;;  %v802_v27 = vsel %vm406_vm1, %v787_v19, %v801_v23  ;;  %v813_v28 = vrot.slane %v792_v20, 4 }
 0x171   : > { %v798_v29 = vperm.slane %v794_v25, %v1776_v21  ;;  %v810_v31 = vperm.slane %v802_v27, %v1793_v45  ;;  %s2087_s14 = sld [smem:[#allocation26_spill]]  ;;  %s358_s19 = scalar_lea.vmem [#allocation13], %s1864_s11 }
 0x172   : > { %v800_v32 = vsel %vm406_vm1, %v799_v26, %v781_v11  ;;  %s899_s20 = sshll.u32 %s358_s19, 4  ;;  %s900_s20 = int_to_ptr.vmem [resolvable:$true] %s899_s20 }
 0x173   : > { %v806_v33 = vperm.slane %v800_v32, %v1793_v45  ;;  %v811_v34 = vrot.slane %v798_v29, 4  ;;  %v814_v36 = vsel %vm406_vm1, %v798_v29, %v813_v28  ;;  %v829_v37 = vrot.slane %v810_v31, 4 }
 0x174   : > { %v822_v38 = vperm.slane %v814_v36, %v1793_v45 }
 0x175   : > { %v812_v39 = vsel %vm406_vm1, %v811_v34, %v792_v20  ;;  %v825_v40 = vrot.slane %v806_v33, 4 }
 0x176   : > { %v818_v21 = vperm.slane %v812_v39, %v1793_v45  ;;  %v827_v41 = vrot.slane %v822_v38, 4  ;;  %v830_v42 = vsel %vm406_vm1, %v822_v38, %v829_v37 }
 0x177   : > { %s898_s12 = scalar_lea.hbm %s2087_s14, %s1854_s24  ;;  %v834_v43 = vpack.c.bf16 %v830_v42, %v830_v42  ;;  %s1487_s15 = scalar_lea.hbm %s2087_s14, 64 }
 0x178   : > { %v823_v44 = vrot.slane %v818_v21, 4  ;;  %v826_v46 = vsel %vm406_vm1, %v818_v21, %v825_v40  ;;  %v828_v47 = vsel %vm406_vm1, %v827_v41, %v810_v31  ;;  %s2004_s16 = sshll.u32 %s898_s12, 4  ;;  %s902_s16 = int_to_ptr.hbm [resolvable:$true] %s2004_s16 }
 0x179   : > { %v832_v7 = vpack.c.bf16 %v826_v46, %v826_v46  ;;  %v833_v16 = vpack.c.bf16 %v828_v47, %v828_v47  ;;  %838 = vst.msk [vmem:[%s358_s19 + $0xc] sm:$0xf] %vm520_vm2, %v834_v43  ;;  %s1481_s24 = sshra.s32 %s902_s16, 4  ;;  %s1482_s24 = int_to_ptr.hbm [resolvable:$true] %s1481_s24 }
 0x17a   : > { %v824_v45 = vsel %vm406_vm1, %v823_v44, %v806_v33  ;;  %s1483_s11 = scalar_lea.hbm %s1482_s24, 16  ;;  %p1488_p11 = scmp.lt.s32.totalorder %s1482_s24, %s2087_s14 }
 0x17b   : > { %v831_v49 = vpack.c.bf16 %v824_v45, %v824_v45  ;;  %836 = vst.msk [vmem:[%s358_s19 + $0x4] sm:$0xf] %vm520_vm2, %v832_v7  ;;  %p1484_p8 = scmp.ne.s32.totalorder %s1482_s24, %s1483_s11  ;;  %p1489_p12 = scmp.lt.s32.totalorder %s1487_s15, %s1483_s11 }
 0x17c   : > { %837 = vst.msk [vmem:[%s358_s19 + $0x8] sm:$0xf] %vm520_vm2, %v833_v16 }
 0x17d   : > { %835 = vst.msk [vmem:[%s358_s19] sm:$0xf] %vm520_vm2, %v831_v49  ;;  %p1485_p9 = pnand %p1484_p8, %p1728_p2  ;;  %p1490_p13 = por %p1489_p12, %p1488_p11 }
 0x17f   : > { %p1486_p10 = pneg %p1485_p9 }
 0x181   : > { %p1491_p0 = pnand %p1490_p13, %p1486_p10 }
 0x183   : > { %1494 = shalt.err (!%p1491_p0)
}
 0x184   : > { %1164 = dma.vmem_to_hbm [thread:$0]  (%p1728_p2), %s900_s20, 256, %s902_s16, %s1970_s7, %s1585_s6, %s1589_s8, %s1590_s9  }
 0x185 PF: > { %s2088_s18 = sld [smem:[#allocation19_spill]]  ;;  %p1199_p5 = scmp.ge.s32.totalorder %s1577_s28, 2 }
 0x187   : > { %p1183_p6 = pnand %p1199_p5, %p1734_p4 }
 0x189   : > { %p1184_p7 = pneg %p1183_p6 }
 0x18b   : > { %s916_s21 = sand.u32 1, %s2088_s18  }
 0x18c   : > { %s917_s29 = scalar_lea.sflag [#allocation4], %s916_s21 }
 0x18d   : > { %1540 = dma.done.wait (%p1184_p7), %s917_s29, 256  }
 0x18e   : > { %1542 = vsyncadd (%p1184_p7), %s917_s29, 4294967040  ;;  %s2090_s25 = sadd.s32 4294967294, %s1577_s28  }
 0x18f   : > { %s926_s17 = sand.u32 1, %s2090_s25  }
 0x190   : > { %s927_s12 = scalar_lea.sflag [#allocation12], %s926_s17 }
 0x191   : > { %1544 = dma.done.wait (%p1184_p7), %s927_s12, 512  }
 0x192   : > { %1546 = vsyncadd (%p1184_p7), %s927_s12, 4294966784  ;;  %s28_s28 = sadd.s32 1, %s1577_s28   ;;  %s2091_s6 = sld [smem:[#allocation20_spill]] }
 0x193   : > { %p25_p2 = scmp.ge.s32.totalorder %s28_s28, 6   ;;  %s2092_s8 = sld [smem:[#allocation21_spill]] }
 0x194   : > { %s2093_s21 = smov %s1553_s22  ;;  %s2094_s22 = smov %s1557_s23 }
 0x195   : > { %s2095_s23 = smov %s1741_s13  ;;  %s2096_s24 = smov %s1569_s26 }
 0x196   : > { %s2097_s25 = smov %s1573_s27  ;;  %27 = sbr.rel (!%p25_p2) target bundleno = 16 (0x10), region = 125 }
 0x198   : > { %s2098_s26 = smov %s2091_s6 }
 0x199   : > { %s2099_s27 = smov %s2092_s8 }
 0x19b   :  { %943 = vsyncpa [#allocation3], 1 }
 0x19c   :  { %945 = vsyncpa [#allocation3 + $0x1], 1 }
 0x19d   :  { %946 = vsyncpa [#allocation6], 1 }
 0x19e   :  { %947 = vsyncpa [#allocation9], 1 }
 0x19f   :  { %948 = vsyncpa [#allocation4], 1 }
 0x1a0   :  { %950 = vsyncpa [#allocation4 + $0x1], 1 }
 0x1a1   :  { %951 = vsyncpa [#allocation12], 1 }
 0x1a2   :  { %953 = vsyncpa [#allocation12 + $0x1], 1 }

// kernel: tpu_custom_call.1
= control target key start
LH: loop header
LB: loop body
LE: loop exit
PB: predicated region body
PF: predicated region fallthrough
CT: control target
= control target key end

     0   :  { %s2057_s0 = inlined_call_operand.hbm [shape: bf16[2,16,32], index: 0, kind: input, shape index: {}]   ;;  %s2058_s1 = inlined_call_operand.hbm [shape: bf16[32,128], index: 1, kind: input, shape index: {}]   ;;  %s2059_s2 = inlined_call_operand.hbm [shape: bf16[32,128], index: 2, kind: input, shape index: {}]   ;;  %s2060_s3 = inlined_call_operand.hbm [shape: bf16[32,128], index: 3, kind: input, shape index: {}]   ;;  %s2061_s4 = inlined_call_operand.hbm [shape: bf16[2,4,16,32], index: 4, kind: output, shape index: {0}]   ;;  %s2062_s5 = inlined_call_operand.hbm [shape: bf16[2,4,16,32], index: 5, kind: output, shape index: {1}]   ;;  %s2063_s6 = inlined_call_operand.hbm [shape: bf16[2,4,16,32], index: 6, kind: output, shape index: {2}]  }
   0x1   :  { %2070 = sst [smem:[#allocation23_spill]] %s2058_s1 }
   0x2   :  { %2071 = sst [smem:[#allocation24_spill]] %s2059_s2 }
   0x3   :  { %2072 = sst [smem:[#allocation25_spill]] %s2060_s3 }
   0x4   :  { %2073 = sst [smem:[#allocation26_spill]] %s2063_s6 }
   0x5   :  { %12 = vsyncpa [#allocation3], 0 }
   0x6   :  { %14 = vsyncpa [#allocation3 + $0x1], 0 }
   0x7   :  { %15 = vsyncpa [#allocation6], 0 }
   0x8   :  { %16 = vsyncpa [#allocation9], 0 }
   0x9   :  { %17 = vsyncpa [#allocation4], 0 }
   0xa   :  { %19 = vsyncpa [#allocation4 + $0x1], 0 }
   0xb   :  { %20 = vsyncpa [#allocation12], 0 }
   0xc   :  { %22 = vsyncpa [#allocation12 + $0x1], 0  ;;  %s1626_s21 = smov 0   ;;  %s1628_s22 = smov 0  }
   0xd   :  { %s1630_s23 = smov 0   ;;  %s1632_s24 = smov 0  }
   0xe   :  { %s1634_s25 = smov 0   ;;  %s1636_s26 = smov 0  }
   0xf   :  { %s1638_s27 = smov 0   ;;  %s1640_s28 = smov 0  }
  0x10 LB: > { %2074 = sst [smem:[#allocation19_spill]] %s1549_s21  ;;  %s1667_s29 = sadd.s32 4294967295, %s1577_s28   ;;  %s1577_s28 = sphi %s1640_s28, %s28_s28   ;;  %s1573_s27 = sphi %s1638_s27, %s2099_s27   ;;  %s1569_s26 = sphi %s1636_s26, %s2098_s26   ;;  %s1565_s25 = sphi %s1634_s25, %s2097_s25   ;;  %s1561_s24 = sphi %s1632_s24, %s2096_s24   ;;  %s1557_s23 = sphi %s1630_s23, %s2095_s23   ;;  %s1553_s22 = sphi %s1628_s22, %s2094_s22   ;;  %s1549_s21 = sphi %s1626_s21, %s2093_s21  }
  0x11   : > { %p1088_p0 = scmp.ge.s32.totalorder %s1577_s28, 1  ;;  %p63_p1 = scmp.eq.s32.totalorder %s1667_s29, 0 }
  0x12   : > { %p220_p2 = scmp.lt.s32.totalorder %s1577_s28, 5  ;;  %s2075_s1 = sld [smem:[#allocation23_spill]] }
  0x13   : > { %s1579_s10 = smov [#allocation5]   ;;  %s2078_s2 = sld [smem:[#allocation24_spill]] }
  0x14   : > { %p1675_p3 = pnand %p1088_p0, %p220_p2  ;;  %s233_s11 = sshll.u32 %s1579_s10, 4  ;;  %s234_s11 = int_to_ptr.vmem [resolvable:$true] %s233_s11 }
  0x15   : > { %s1580_s16 = smov 64   ;;  %s1581_s17 = smov 4  }
  0x16   : > { %p1168_p4 = pneg %p1675_p3  ;;  %s1582_s18 = smov [#allocation7]  }
  0x17   : > { %s247_s19 = sshll.u32 %s1582_s18, 4  ;;  %s2079_s3 = sld [smem:[#allocation25_spill]]  ;;  %s248_s19 = int_to_ptr.vmem [resolvable:$true] %s247_s19 }
  0x18   : > { %s231_s8 = sshll.u32 %s2075_s1, 4  ;;  %p1683_p5 = pnand %p1168_p4, %p63_p1  ;;  %s232_s8 = int_to_ptr.hbm [resolvable:$true] %s231_s8 }
  0x19   : > { %s245_s15 = sshll.u32 %s2078_s2, 4  ;;  %s1583_s10 = smov [#allocation8]   ;;  %s246_s15 = int_to_ptr.hbm [resolvable:$true] %s245_s15 }
  0x1a   : > { %1171 = dma.hbm_to_vmem [thread:$0]  (!%p1683_p5), %s232_s8, 256, %s234_s11, [#allocation6], %s1580_s16, %s1580_s16, %s1581_s17  }
  0x1b   : > { %1174 = dma.hbm_to_vmem [thread:$0]  (!%p1683_p5), %s246_s15, 256, %s248_s19, [#allocation6], %s1580_s16, %s1580_s16, %s1581_s17  }
  0x1c   : > { %s261_s13 = sshll.u32 %s1583_s10, 4  ;;  %s2064_s8 = sadd.s32 4294967294, %s1577_s28   ;;  %s262_s13 = int_to_ptr.vmem [resolvable:$true] %s261_s13 }
  0x1d   : > { %s259_s7 = sshll.u32 %s2079_s3, 4  ;;  %s37_s11 = sadd.s32 1, %s1569_s26  ;;  %s260_s7 = int_to_ptr.hbm [resolvable:$true] %s259_s7 }
  0x1e   : > { %1177 = dma.hbm_to_vmem [thread:$0]  (!%p1683_p5), %s260_s7, 256, %s262_s13, [#allocation9], %s1580_s16, %s1580_s16, %s1581_s17  }
  0x1f   : > { %s40_s14 = sadd.s32 1, %s1573_s27  ;;  %p38_p6 = scmp.ge.s32.totalorder %s37_s11, 2 }
  0x20   : > { %s49_s18 = sadd.s32 1, %s1557_s23  ;;  %p56_p7 = scmp.ne.s32.totalorder %s1557_s23, %s1553_s22 }
  0x21   : > { %p57_p8 = scmp.eq.s32.totalorder %s1577_s28, 0  ;;  %s2101_s11 = smov (%p38_p6, %s37_s11), 0 }
  0x22   : > { %2080 = sst [smem:[#allocation20_spill]] %s2101_s11  ;;  %s2103_s14 = smov (!%p38_p6, %s40_s14), %s1573_s27 }
  0x23   : > { %s45_s15 = ssub.s32 %s1569_s26, %s2101_s11  ;;  %p1711_p9 = por %p57_p8, %p56_p7 }
  0x24   : > { %p42_p10 = scmp.ge.s32.totalorder %s2103_s14, 2  ;;  %p62_p11 = scmp.ne.s32.totalorder %s1553_s22, %s1549_s21 }
  0x25   : > { %p151_p12 = scmp.eq.s32.totalorder %s1667_s29, 3  ;;  %p157_p13 = scmp.eq.s32.totalorder %s2064_s8, 3 }
  0x26   : > { %s2105_s14 = smov (%p42_p10, %s2103_s14), 0  ;;  %p1724_p0 = por %p63_p1, %p62_p11 }
  0x27   : > { %2082 = sst [smem:[#allocation21_spill]] %s2105_s14  ;;  %p1728_p2 = por %p151_p12, %p56_p7 }
  0x28   : > { %s44_s19 = ssub.s32 %s1573_s27, %s2105_s14  ;;  %p1734_p4 = por %p157_p13, %p62_p11 }
  0x29   : > { %s46_s30 = sor.u32 %s45_s15, %s44_s19  ;;  %p1195_p5 = scmp.lt.s32.totalorder %s1577_s28, 4 }
  0x2a   : > { %s2085_s20 = scalar_select %p1734_p4, 1, 0 }
  0x2b   : > { %p47_p6 = scmp.eq.s32.totalorder %s46_s30, 0  ;;  %s275_s7 = sand.u32 1, %s1557_s23  }
  0x2c   : > { %2086 = sst [smem:[#allocation22_spill]] %s2085_s20  ;;  %s1093_s10 = sshll.u32 %s275_s7, 2 }
  0x2d   : > { %s1741_s13 = scalar_select %p47_p6, %s1557_s23, %s49_s18  }
  0x2e   : > { %s1094_s8 = sshll.u32 %s1573_s27, 1  ;;  %s279_s2 = scalar_lea.vmem [#allocation2], %s1093_s10 }
  0x2f   : > { %s283_s1 = sadd.s32 %s1569_s26, %s1094_s8  ;;  %s289_s3 = sshll.u32 %s279_s2, 4  ;;  %s290_s3 = int_to_ptr.vmem [resolvable:$true] %s289_s3 }
  0x30   : > { %s1095_s11 = sshll.u32 %s283_s1, 2  ;;  %p1179_p7 = pnand %p1195_p5, %p1711_p9 }
  0x31   : > { %s285_s14 = scalar_lea.hbm %s2057_s0, %s1095_s11  ;;  %s276_s15 = scalar_lea.sflag [#allocation3], %s275_s7 }
  0x32   : > { %s287_s20 = sshll.u32 %s285_s14, 4  ;;  %298 = sbr.rel (%p1675_p3) target bundleno = 389 (0x185), region = 36  ;;  %s288_s20 = int_to_ptr.hbm [resolvable:$true] %s287_s20 }
  0x33   : > { %1181 = dma.hbm_to_vmem [thread:$0]  (!%p1179_p7), %s288_s20, 64, %s290_s3, %s276_s15  }
  0x34   : > { %s1753_s8 = sand.u32 (!%p1675_p3), 1, %s1553_s22  }
  0x35   : > { %s1097_s1 = sshll.u32 (!%p1675_p3), %s1753_s8, 2  ;;  %s301_s2 = scalar_lea.sflag (!%p1675_p3), [#allocation3], %s1753_s8 }
  0x36   : > { %s304_s18 = scalar_lea.vmem (!%p1675_p3), [#allocation2], %s1097_s1 }
  0x37   : > { %1528 = dma.done.wait (%p1724_p0), %s301_s2, 64  }
  0x38   : > { %1530 = vsyncadd (%p1724_p0), %s301_s2, 4294967232 }
  0x39   : > { %1532 = dma.done.wait (%p63_p1), [#allocation6], 512  }
  0x3a   : > { %1534 = vsyncadd (%p63_p1), [#allocation6], 4294966784 }
  0x3b   : > { %1536 = dma.done.wait (%p63_p1), [#allocation9], 256  }
  0x3c   : > { %1538 = vsyncadd (%p63_p1), [#allocation9], 4294967040  ;;  %v1143_v0 = vld [vmem:[#allocation5 + $0x8] sm:$0xff]  ;;  %v1145_v1 = vld [vmem:[#allocation7 + $0x8] sm:$0xff]  ;;  %vm377_vm0 = vcmask 261120   ;;  %s1584_s3 = smov 96  }
  0x3d   : > { %v1147_v2 = vld [vmem:[#allocation8 + $0x8] sm:$0xff]  ;;  %387 = vmatpush.bf16.msra.mxu0 %v1143_v0  ;;  %547 = vmatpush.bf16.msra.mxu1 %v1145_v1  ;;  %v1142_v3 = vld [vmem:[#allocation5] sm:$0xff]  ;;  %v1144_v4 = vld [vmem:[#allocation7] sm:$0xff]  ;;  %s1585_s6 = smov 64   ;;  %s1586_s21 = smov 32   ;;  %vm406_vm1 = vcmask 1047556  }
  0x3e   : > { %704 = vmatpush.bf16.msra.mxu2 %v1147_v2  ;;  %v1146_v5 = vld [vmem:[#allocation8] sm:$0xff]  ;;  %v360_v6 = vld [vmem:[%s304_s18] sm:$0xf]  ;;  %v1587_v17 = vmov 1983009808   ;;  %s1134_s9 = sshll.u32 %s1565_s25, 3 }
  0x3f   : > { %v411_v18 = vunpack.c.l.s4 %v1587_v17  ;;  %v1588_v33 = vmov 1934713408   ;;  %vm520_vm2 = vcmask 257024   ;;  %s860_s25 = sadd.s32 %s1561_s24, %s1134_s9  ;;  %s1864_s11 = sshll.u32 %s1753_s8, 4 }
  0x40   : > { %v435_v34 = vunpack.c.l.s4 %v1588_v33  ;;  %s1854_s24 = sshll.u32 %s860_s25, 2  ;;  %s344_s19 = scalar_lea.vmem [#allocation10], %s1864_s11 }
  0x41   : > { %388 = vmatpush.bf16.msra.mxu0 %v1142_v3  ;;  %548 = vmatpush.bf16.msra.mxu1 %v1144_v4  ;;  %v1776_v21 = vunpack.c.0.s8 %v411_v18  ;;  %s862_s16 = scalar_lea.hbm %s2061_s4, %s1854_s24  ;;  %s863_s20 = sshll.u32 %s344_s19, 4  ;;  %s1893_s20 = int_to_ptr.vmem [resolvable:$true] %s863_s20 }
  0x42   : > { %705 = vmatpush.bf16.msra.mxu2 %v1146_v5  ;;  %v1793_v45 = vunpack.c.0.s8 %v435_v34  ;;  %s1880_s30 = sshll.u32 %s862_s16, 4  ;;  %s840_s7 = scalar_lea.sflag [#allocation4], %s1753_s8  ;;  %s866_s30 = int_to_ptr.hbm [resolvable:$true] %s1880_s30 }
  0x43   : > { %s1425_s10 = sshra.s32 %s866_s30, 4  ;;  %s1431_s18 = scalar_lea.hbm %s2061_s4, 64  ;;  %s1426_s10 = int_to_ptr.hbm [resolvable:$true] %s1425_s10 }
  0x44   : > { %1112 = vmatmul.msk.bf16.vlgmr.msra.gmra.mxu0 %vm377_vm0, %v360_v6  ;;  %1121 = vmatmul.msk.bf16.vlgmr.msra.gmra.mxu1 %vm377_vm0, %v360_v6  ;;  %s1427_s15 = scalar_lea.hbm %s1426_s10, 16  ;;  %p1432_p9 = scmp.lt.s32.totalorder %s1426_s10, %s2061_s4 }
  0x45   : > { %1130 = vmatmul.msk.bf16.vlgmr.msra.gmra.mxu2 %vm377_vm0, %v360_v6  ;;  %p1428_p1 = scmp.ne.s32.totalorder %s1426_s10, %s1427_s15  ;;  %p1433_p10 = scmp.lt.s32.totalorder %s1431_s18, %s1427_s15 }
  0x47   : > { %p1429_p3 = pnand %p1428_p1, %p1728_p2  ;;  %p1434_p11 = por %p1433_p10, %p1432_p9 }
  0x49   : > { %p1430_p8 = pneg %p1429_p3 }
  0x4b   : > { %p1435_p12 = pnand %p1434_p11, %p1430_p8 }
  0xc1   : > { %v390_v7 = vpop.f32.mrf.mxu0  ;;  %v550_v8 = vpop.f32.mrf.mxu1 }
  0xc2   : > { %v394_v9 = vmul.f32 0.17677669, %v390_v7  ;;  %v566_v29 = vrot.slane %v550_v8, 4 }
  0xc4   : > { %v1281_v10 = vpack.i.bf16 %v394_v9, %v550_v8  ;;  %v408_v28 = vrot.slane %v394_v9, 4 }
  0xc6   : > { %1282 = vrot.lane.b32.xlu1 %v1281_v10, %s1584_s3  ;;  %1277 = vrot.lane.b32.xlu0 %v1281_v10, %s1585_s6 }
  0xc8   : > { %v1770_v11 = vpop.f32.mrf.mxu2 }
  0xc9   : > { %712 = vrot.lane.b32.xlu2 %v1770_v11, %s1584_s3  ;;  %v392_v12 = vpop.f32.mrf.mxu0  ;;  %v552_v13 = vpop.f32.mrf.mxu1  ;;  %v723_v46 = vrot.slane %v1770_v11, 4 }
  0xce   : > { %1287 = vrot.lane.b32.xlu1 %v1281_v10, %s1586_s21  ;;  %715 = vrot.lane.b32.xlu0 %v1770_v11, %s1585_s6 }
  0xd0   : > { %v709_v14 = vpop.f32.mrf.mxu2 }
  0xd1   : > { %718 = vrot.lane.b32.xlu2 %v1770_v11, %s1586_s21 }
 0x123   : > { %v713_v15 = vpop.permute.xlu2 %712 }
 0x124   : > { %v735_v19 = vrot.slane %v713_v15, 4 }
 0x12b   : > { %v719_v16 = vpop.permute.xlu2 %718 }
 0x12c   : > { %v733_v20 = vrot.slane %v719_v16, 4  ;;  %v736_v22 = vsel %vm406_vm1, %v719_v16, %v735_v19 }
 0x12d   : > { %v1781_v30 = vperm.slane %v736_v22, %v1776_v21 }
 0x12e   : > { %v734_v25 = vsel %vm406_vm1, %v733_v20, %v713_v15 }
 0x12f   : > { %v1785_v35 = vperm.slane %v734_v25, %v1776_v21  ;;  %v757_v48 = vrot.slane %v1781_v30, 4 }
 0x131   : > { %v745_v47 = vrot.slane %v1785_v35, 4 }
 0x138   : > { %v1283_v23 = vpop.permute.xlu1 %1282  ;;  %v1278_v24 = vpop.permute.xlu0 %1277 }
 0x139   : > { %v1280_v26 = vunpack.i.h.bf16 %v1278_v24  ;;  %v1279_v27 = vunpack.i.l.bf16 %v1278_v24  ;;  %v1285_v36 = vunpack.i.h.bf16 %v1283_v23  ;;  %v1284_v39 = vunpack.i.l.bf16 %v1283_v23 }
 0x13b   : > { %v405_v31 = vrot.slane %v1280_v26, 4  ;;  %v409_v32 = vsel %vm406_vm1, %v1280_v26, %v408_v28  ;;  %v564_v37 = vrot.slane %v1279_v27, 4  ;;  %v567_v38 = vsel %vm406_vm1, %v1279_v27, %v566_v29 }
 0x13c   : > { %v417_v42 = vperm.slane %v409_v32, %v1776_v21  ;;  %v575_v44 = vperm.slane %v567_v38, %v1776_v21  ;;  %v420_v49 = vrot.slane %v1285_v36, 4  ;;  %v578_v53 = vrot.slane %v1284_v39, 4 }
 0x13d   : > { %v407_v40 = vsel %vm406_vm1, %v405_v31, %v394_v9  ;;  %v565_v43 = vsel %vm406_vm1, %v564_v37, %v550_v8 }
 0x13e   : > { %v413_v41 = vperm.slane %v407_v40, %v1776_v21  ;;  %v571_v50 = vperm.slane %v565_v43, %v1776_v21  ;;  %v444_v58 = vrot.slane %v417_v42, 4  ;;  %v602_v59 = vrot.slane %v575_v44, 4 }
 0x140   : > { %v1288_v51 = vpop.permute.xlu1 %1287  ;;  %v716_v52 = vpop.permute.xlu0 %715  ;;  %v432_v57 = vrot.slane %v413_v41, 4  ;;  %v590_v1 = vrot.slane %v571_v50, 4 }
 0x141   : > { %v1290_v54 = vunpack.i.h.bf16 %v1288_v51  ;;  %v1289_v55 = vunpack.i.l.bf16 %v1288_v51  ;;  %v721_v56 = vrot.slane %v716_v52, 4  ;;  %v724_v60 = vsel %vm406_vm1, %v716_v52, %v723_v46 }
 0x142   : > { %v1812_v8 = vperm.slane %v724_v60, %v1776_v21 }
 0x143   : > { %v418_v61 = vrot.slane %v1290_v54, 4  ;;  %v421_v62 = vsel %vm406_vm1, %v1290_v54, %v420_v49  ;;  %v576_v63 = vrot.slane %v1289_v55, 4  ;;  %v579_v0 = vsel %vm406_vm1, %v1289_v55, %v578_v53 }
 0x144   : > { %v429_v2 = vperm.slane %v421_v62, %v1776_v21  ;;  %v587_v3 = vperm.slane %v579_v0, %v1776_v21  ;;  %v722_v4 = vsel %vm406_vm1, %v721_v56, %v1770_v11 }
 0x145   : > { %v419_v5 = vsel %vm406_vm1, %v418_v61, %v1285_v36  ;;  %v577_v6 = vsel %vm406_vm1, %v576_v63, %v1284_v39  ;;  %v1809_v7 = vperm.slane %v722_v4, %v1776_v21 }
 0x146   : > { %v425_v9 = vperm.slane %v419_v5, %v1776_v21  ;;  %v442_v10 = vrot.slane %v429_v2, 4  ;;  %v445_v12 = vsel %vm406_vm1, %v429_v2, %v444_v58  ;;  %v583_v13 = vperm.slane %v577_v6, %v1776_v21 }
 0x147   : > { %v453_v14 = vperm.slane %v445_v12, %v1793_v45  ;;  %v600_v11 = vrot.slane %v587_v3, 4  ;;  %v603_v15 = vsel %vm406_vm1, %v587_v3, %v602_v59  ;;  %v1821_v16 = vsel %vm406_vm1, %v745_v47, %v1809_v7 }
 0x148   : > { %v430_v17 = vrot.slane %v425_v9, 4  ;;  %v433_v18 = vsel %vm406_vm1, %v425_v9, %v432_v57  ;;  %v443_v19 = vsel %vm406_vm1, %v442_v10, %v417_v42  ;;  %v588_v20 = vrot.slane %v583_v13, 4 }
 0x149   : > { %v441_v22 = vperm.slane %v433_v18, %v1793_v45  ;;  %v449_v23 = vperm.slane %v443_v19, %v1793_v45  ;;  %v460_v24 = vrot.slane %v453_v14, 4  ;;  %v591_v25 = vsel %vm406_vm1, %v583_v13, %v590_v1 }
 0x14a   : > { %v431_v26 = vsel %vm406_vm1, %v430_v17, %v413_v41  ;;  %v589_v27 = vsel %vm406_vm1, %v588_v20, %v571_v50  ;;  %v599_v28 = vperm.slane %v591_v25, %v1793_v45  ;;  %v601_v29 = vsel %vm406_vm1, %v600_v11, %v575_v44 }
 0x14b   : > { %v437_v31 = vperm.slane %v431_v26, %v1793_v45  ;;  %v456_v32 = vrot.slane %v441_v22, 4  ;;  %v458_v33 = vrot.slane %v449_v23, 4  ;;  %v461_v34 = vsel %vm406_vm1, 0.0, %v460_v24 }
 0x14c   : > { %v473_v36 = vsel %vm406_vm1, %v460_v24, %v449_v23  ;;  %v478_v37 = vrot.slane %v461_v34, 4  ;;  %v595_v38 = vperm.slane %v589_v27, %v1793_v45  ;;  %v607_v39 = vperm.slane %v601_v29, %v1793_v45 }
 0x14d   : > { %v454_v40 = vrot.slane %v437_v31, 4  ;;  %v457_v41 = vsel %vm406_vm1, 0.0, %v456_v32  ;;  %v459_v42 = vsel %vm406_vm1, 0.0, %v458_v33  ;;  %v462_v43 = vsel %vm406_vm1, %v456_v32, %v437_v31 }
 0x14e   : > { %v466_v44 = vperm.slane %v462_v43, %v1776_v21  ;;  %v467_v46 = vrot.slane %v457_v41, 4  ;;  %v477_v47 = vperm.slane %v473_v36, %v1776_v21  ;;  %v479_v49 = vsel %vm406_vm1, %v478_v37, %v459_v42 }
 0x14f   : > { %v455_v50 = vsel %vm406_vm1, 0.0, %v454_v40  ;;  %v483_v51 = vperm.slane %v479_v49, %v1776_v21  ;;  %v611_v52 = vperm.slane %v603_v15, %v1793_v45  ;;  %v612_v53 = vrot.slane %v595_v38, 4 }
 0x150   : > { %v468_v54 = vsel %vm406_vm1, %v467_v46, %v455_v50  ;;  %v486_v55 = vrot.slane %v466_v44, 4  ;;  %v498_v56 = vrot.slane %v477_v47, 4  ;;  %v614_v57 = vrot.slane %v599_v28, 4 }
 0x151   : > { %v472_v58 = vperm.slane %v468_v54, %v1776_v21  ;;  %v496_v59 = vrot.slane %v483_v51, 4  ;;  %v613_v60 = vsel %vm406_vm1, 0.0, %v612_v53  ;;  %v616_v61 = vrot.slane %v607_v39, 4 }
 0x152   : > { %v499_v62 = vsel %vm406_vm1, %v483_v51, %v498_v56  ;;  %v615_v63 = vsel %vm406_vm1, 0.0, %v614_v57  ;;  %v618_v0 = vrot.slane %v611_v52, 4  ;;  %v620_v1 = vsel %vm406_vm1, %v614_v57, %v595_v38 }
 0x153   : > { %v484_v2 = vrot.slane %v472_v58, 4  ;;  %v487_v3 = vsel %vm406_vm1, %v472_v58, %v486_v55  ;;  %v497_v4 = vsel %vm406_vm1, %v496_v59, %v477_v47  ;;  %v507_v5 = vperm.slane %v499_v62, %v1793_v45 }
 0x154   : > { %v495_v6 = vperm.slane %v487_v3, %v1793_v45  ;;  %v503_v9 = vperm.slane %v497_v4, %v1793_v45  ;;  %v617_v10 = vsel %vm406_vm1, 0.0, %v616_v61  ;;  %v619_v12 = vsel %vm406_vm1, 0.0, %v618_v0 }
 0x155   : > { %v485_v13 = vsel %vm406_vm1, %v484_v2, %v466_v44  ;;  %v512_v14 = vrot.slane %v507_v5, 4  ;;  %v624_v11 = vperm.slane %v620_v1, %v1776_v21  ;;  %v625_v15 = vrot.slane %v615_v63, 4 }
 0x156   : > { %v491_v17 = vperm.slane %v485_v13, %v1793_v45  ;;  %v508_v18 = vrot.slane %v503_v9, 4  ;;  %v514_v19 = vrot.slane %v495_v6, 4  ;;  %v631_v20 = vsel %vm406_vm1, %v618_v0, %v607_v39 }
 0x157   : > { %v513_v22 = vsel %vm406_vm1, %v512_v14, %v495_v6  ;;  %v626_v23 = vsel %vm406_vm1, %v625_v15, %v613_v60  ;;  %v635_v24 = vperm.slane %v631_v20, %v1776_v21  ;;  %v636_v25 = vrot.slane %v619_v12, 4 }
 0x158   : > { %v509_v26 = vsel %vm406_vm1, %v508_v18, %v491_v17  ;;  %v510_v27 = vrot.slane %v491_v17, 4  ;;  %v515_v28 = vsel %vm406_vm1, %v507_v5, %v514_v19  ;;  %v518_v29 = vpack.c.bf16 %v513_v22, %v513_v22 }
 0x159   : > { %v516_v31 = vpack.c.bf16 %v509_v26, %v509_v26  ;;  %v519_v32 = vpack.c.bf16 %v515_v28, %v515_v28  ;;  %v630_v33 = vperm.slane %v626_v23, %v1776_v21  ;;  %v637_v34 = vsel %vm406_vm1, %v636_v25, %v617_v10 }
 0x15a   : > { %v511_v36 = vsel %vm406_vm1, %v503_v9, %v510_v27  ;;  %v641_v37 = vperm.slane %v637_v34, %v1776_v21  ;;  %v644_v38 = vrot.slane %v624_v11, 4  ;;  %v656_v39 = vrot.slane %v635_v24, 4  ;;  %523 = vst.msk [vmem:[%s344_s19 + $0x8] sm:$0xf] %vm520_vm2, %v518_v29 }
 0x15b   : > { %v517_v40 = vpack.c.bf16 %v511_v36, %v511_v36  ;;  %v642_v41 = vrot.slane %v630_v33, 4  ;;  %v747_v42 = vrot.slane %v1809_v7, 4  ;;  %v1890_v43 = vperm.slane %v1821_v16, %v1793_v45  ;;  %521 = vst.msk [vmem:[%s344_s19] sm:$0xf] %vm520_vm2, %v516_v31 }
 0x15c   : > { %v645_v44 = vsel %vm406_vm1, %v630_v33, %v644_v38  ;;  %v654_v46 = vrot.slane %v641_v37, 4  ;;  %v657_v47 = vsel %vm406_vm1, %v641_v37, %v656_v39  ;;  %v758_v7 = vsel %vm406_vm1, %v757_v48, %v1812_v8  ;;  %524 = vst.msk [vmem:[%s344_s19 + $0xc] sm:$0xf] %vm520_vm2, %v519_v32 }
 0x15d   : > { %v643_v16 = vsel %vm406_vm1, %v642_v41, %v624_v11  ;;  %v653_v49 = vperm.slane %v645_v44, %v1793_v45  ;;  %v665_v50 = vperm.slane %v657_v47, %v1793_v45  ;;  %v748_v51 = vsel %vm406_vm1, %v1785_v35, %v747_v42  ;;  %522 = vst.msk [vmem:[%s344_s19 + $0x4] sm:$0xf] %vm520_vm2, %v517_v40 }
 0x15e   : > { %v649_v52 = vperm.slane %v643_v16, %v1793_v45  ;;  %v655_v53 = vsel %vm406_vm1, %v654_v46, %v635_v24  ;;  %v756_v48 = vperm.slane %v748_v51, %v1793_v45  ;;  %v759_v54 = vrot.slane %v1812_v8, 4 }
 0x15f   : > { %1438 = shalt.err (!%p1435_p12)
}
 0x160   : > { %s1589_s8 = smov 128   ;;  %s1590_s9 = smov 4   ;;  %v661_v35 = vperm.slane %v655_v53, %v1793_v45  ;;  %v670_v8 = vrot.slane %v665_v50, 4  ;;  %v672_v55 = vrot.slane %v653_v49, 4  ;;  %v764_v56 = vperm.slane %v758_v7, %v1793_v45 }
 0x161   : > { %1162 = dma.vmem_to_hbm [thread:$0]  (%p1728_p2), %s1893_s20, 256, %s866_s30, %s840_s7, %s1585_s6, %s1589_s8, %s1590_s9   ;;  %v668_v57 = vrot.slane %v649_v52, 4  ;;  %v760_v58 = vsel %vm406_vm1, %v1781_v30, %v759_v54  ;;  %v769_v59 = vrot.slane %v1890_v43, 4  ;;  %v771_v60 = vrot.slane %v756_v48, 4 }
 0x162   : > { %s880_s12 = scalar_lea.hbm %s2062_s5, %s1854_s24  ;;  %v666_v61 = vrot.slane %v661_v35, 4  ;;  %v671_v62 = vsel %vm406_vm1, %v670_v8, %v653_v49  ;;  %v673_v63 = vsel %vm406_vm1, %v665_v50, %v672_v55  ;;  %v768_v0 = vperm.slane %v760_v58, %v1793_v45  ;;  %s844_s16 = sand.u32 1, %s1667_s29  }
 0x163   : > { %v669_v1 = vsel %vm406_vm1, %v661_v35, %v668_v57  ;;  %v676_v2 = vpack.c.bf16 %v671_v62, %v671_v62  ;;  %v677_v3 = vpack.c.bf16 %v673_v63, %v673_v63  ;;  %s351_s19 = scalar_lea.vmem [#allocation11], %s1864_s11  ;;  %s1947_s30 = sshll.u32 %s880_s12, 4  ;;  %v772_v5 = vsel %vm406_vm1, 0.0, %v771_v60  ;;  %s884_s30 = int_to_ptr.hbm [resolvable:$true] %s1947_s30 }
 0x164   : > { %s881_s20 = sshll.u32 %s351_s19, 4  ;;  %v667_v30 = vsel %vm406_vm1, %v666_v61, %v649_v52  ;;  %v675_v4 = vpack.c.bf16 %v669_v1, %v669_v1  ;;  %v773_v6 = vrot.slane %v764_v56, 4  ;;  %v775_v10 = vrot.slane %v768_v0, 4  ;;  %s1970_s7 = scalar_lea.sflag [#allocation12], %s844_s16  ;;  %s1957_s20 = int_to_ptr.vmem [resolvable:$true] %s881_s20 }
 0x165   : > { %v674_v9 = vpack.c.bf16 %v667_v30, %v667_v30  ;;  %v777_v12 = vsel %vm406_vm1, %v771_v60, %v1890_v43  ;;  %v782_v13 = vrot.slane %v772_v5, 4  ;;  %680 = vst.msk [vmem:[%s351_s19 + $0x8] sm:$0xf] %vm520_vm2, %v676_v2  ;;  %v770_v14 = vsel %vm406_vm1, 0.0, %v769_v59  ;;  %s1453_s10 = sshra.s32 %s884_s30, 4  ;;  %s1459_s18 = scalar_lea.hbm %s2062_s5, 64  ;;  %s1454_s10 = int_to_ptr.hbm [resolvable:$true] %s1453_s10 }
 0x166   : > { %v781_v11 = vperm.slane %v777_v12, %v1776_v21  ;;  %679 = vst.msk [vmem:[%s351_s19 + $0x4] sm:$0xf] %vm520_vm2, %v675_v4  ;;  %v776_v15 = vsel %vm406_vm1, 0.0, %v775_v10  ;;  %v788_v18 = vsel %vm406_vm1, %v775_v10, %v764_v56  ;;  %v774_v24 = vsel %vm406_vm1, 0.0, %v773_v6  ;;  %s1455_s15 = scalar_lea.hbm %s1454_s10, 16  ;;  %p1460_p6 = scmp.lt.s32.totalorder %s1454_s10, %s2062_s5 }
 0x167   : > { %v783_v17 = vsel %vm406_vm1, %v782_v13, %v770_v14  ;;  %678 = vst.msk [vmem:[%s351_s19] sm:$0xf] %vm520_vm2, %v674_v9  ;;  %v792_v20 = vperm.slane %v788_v18, %v1776_v21  ;;  %v793_v22 = vrot.slane %v776_v15, 4  ;;  %p1456_p13 = scmp.ne.s32.totalorder %s1454_s10, %s1455_s15  ;;  %p1461_p7 = scmp.lt.s32.totalorder %s1459_s18, %s1455_s15 }
 0x168   : > { %v787_v19 = vperm.slane %v783_v17, %v1776_v21  ;;  %v801_v23 = vrot.slane %v781_v11, 4  ;;  %681 = vst.msk [vmem:[%s351_s19 + $0xc] sm:$0xf] %vm520_vm2, %v677_v3 }
 0x169   : > { %p1457_p0 = pnand %p1456_p13, %p1728_p2  ;;  %p1462_p1 = por %p1461_p7, %p1460_p6 }
 0x16b   : > { %p1458_p5 = pneg %p1457_p0 }
 0x16d   : > { %p1463_p3 = pnand %p1462_p1, %p1458_p5 }
 0x16f   : > { %1466 = shalt.err (!%p1463_p3)
}
 0x170   : > { %1163 = dma.vmem_to_hbm [thread:$0]  (%p1728_p2), %s1957_s20, 256, %s884_s30, %s1970_s7, %s1585_s6, %s1589_s8, %s1590_s9   ;;  %v794_v25 = vsel %vm406_vm1, %v793_v22, %v774_v24  ;;  %v799_v26 = vrot.slane %v787_v19, 4  ;;  %v802_v27 = vsel %vm406_vm1, %v787_v19, %v801_v23  ;;  %v813_v28 = vrot.slane %v792_v20, 4 }
 0x171   : > { %v798_v29 = vperm.slane %v794_v25, %v1776_v21  ;;  %v810_v31 = vperm.slane %v802_v27, %v1793_v45  ;;  %s2087_s14 = sld [smem:[#allocation26_spill]]  ;;  %s358_s19 = scalar_lea.vmem [#allocation13], %s1864_s11 }
 0x172   : > { %v800_v32 = vsel %vm406_vm1, %v799_v26, %v781_v11  ;;  %s899_s20 = sshll.u32 %s358_s19, 4  ;;  %s900_s20 = int_to_ptr.vmem [resolvable:$true] %s899_s20 }
 0x173   : > { %v806_v33 = vperm.slane %v800_v32, %v1793_v45  ;;  %v811_v34 = vrot.slane %v798_v29, 4  ;;  %v814_v36 = vsel %vm406_vm1, %v798_v29, %v813_v28  ;;  %v829_v37 = vrot.slane %v810_v31, 4 }
 0x174   : > { %v822_v38 = vperm.slane %v814_v36, %v1793_v45 }
 0x175   : > { %v812_v39 = vsel %vm406_vm1, %v811_v34, %v792_v20  ;;  %v825_v40 = vrot.slane %v806_v33, 4 }
 0x176   : > { %v818_v21 = vperm.slane %v812_v39, %v1793_v45  ;;  %v827_v41 = vrot.slane %v822_v38, 4  ;;  %v830_v42 = vsel %vm406_vm1, %v822_v38, %v829_v37 }
 0x177   : > { %s898_s12 = scalar_lea.hbm %s2087_s14, %s1854_s24  ;;  %v834_v43 = vpack.c.bf16 %v830_v42, %v830_v42  ;;  %s1487_s15 = scalar_lea.hbm %s2087_s14, 64 }
 0x178   : > { %v823_v44 = vrot.slane %v818_v21, 4  ;;  %v826_v46 = vsel %vm406_vm1, %v818_v21, %v825_v40  ;;  %v828_v47 = vsel %vm406_vm1, %v827_v41, %v810_v31  ;;  %s2004_s16 = sshll.u32 %s898_s12, 4  ;;  %s902_s16 = int_to_ptr.hbm [resolvable:$true] %s2004_s16 }
 0x179   : > { %v832_v7 = vpack.c.bf16 %v826_v46, %v826_v46  ;;  %v833_v16 = vpack.c.bf16 %v828_v47, %v828_v47  ;;  %838 = vst.msk [vmem:[%s358_s19 + $0xc] sm:$0xf] %vm520_vm2, %v834_v43  ;;  %s1481_s24 = sshra.s32 %s902_s16, 4  ;;  %s1482_s24 = int_to_ptr.hbm [resolvable:$true] %s1481_s24 }
 0x17a   : > { %v824_v45 = vsel %vm406_vm1, %v823_v44, %v806_v33  ;;  %s1483_s11 = scalar_lea.hbm %s1482_s24, 16  ;;  %p1488_p11 = scmp.lt.s32.totalorder %s1482_s24, %s2087_s14 }
 0x17b   : > { %v831_v49 = vpack.c.bf16 %v824_v45, %v824_v45  ;;  %836 = vst.msk [vmem:[%s358_s19 + $0x4] sm:$0xf] %vm520_vm2, %v832_v7  ;;  %p1484_p8 = scmp.ne.s32.totalorder %s1482_s24, %s1483_s11  ;;  %p1489_p12 = scmp.lt.s32.totalorder %s1487_s15, %s1483_s11 }
 0x17c   : > { %837 = vst.msk [vmem:[%s358_s19 + $0x8] sm:$0xf] %vm520_vm2, %v833_v16 }
 0x17d   : > { %835 = vst.msk [vmem:[%s358_s19] sm:$0xf] %vm520_vm2, %v831_v49  ;;  %p1485_p9 = pnand %p1484_p8, %p1728_p2  ;;  %p1490_p13 = por %p1489_p12, %p1488_p11 }
 0x17f   : > { %p1486_p10 = pneg %p1485_p9 }
 0x181   : > { %p1491_p0 = pnand %p1490_p13, %p1486_p10 }
 0x183   : > { %1494 = shalt.err (!%p1491_p0)
}
 0x184   : > { %1164 = dma.vmem_to_hbm [thread:$0]  (%p1728_p2), %s900_s20, 256, %s902_s16, %s1970_s7, %s1585_s6, %s1589_s8, %s1590_s9  }
 0x185 PF: > { %s2088_s18 = sld [smem:[#allocation19_spill]]  ;;  %p1199_p5 = scmp.ge.s32.totalorder %s1577_s28, 2 }
 0x187   : > { %p1183_p6 = pnand %p1199_p5, %p1734_p4 }
 0x189   : > { %p1184_p7 = pneg %p1183_p6 }
 0x18b   : > { %s916_s21 = sand.u32 1, %s2088_s18  }
 0x18c   : > { %s917_s29 = scalar_lea.sflag [#allocation4], %s916_s21 }
 0x18d   : > { %1540 = dma.done.wait (%p1184_p7), %s917_s29, 256  }
 0x18e   : > { %1542 = vsyncadd (%p1184_p7), %s917_s29, 4294967040  ;;  %s2090_s25 = sadd.s32 4294967294, %s1577_s28  }
 0x18f   : > { %s926_s17 = sand.u32 1, %s2090_s25  }
 0x190   : > { %s927_s12 = scalar_lea.sflag [#allocation12], %s926_s17 }
 0x191   : > { %1544 = dma.done.wait (%p1184_p7), %s927_s12, 512  }
 0x192   : > { %1546 = vsyncadd (%p1184_p7), %s927_s12, 4294966784  ;;  %s28_s28 = sadd.s32 1, %s1577_s28   ;;  %s2091_s6 = sld [smem:[#allocation20_spill]] }
 0x193   : > { %p25_p2 = scmp.ge.s32.totalorder %s28_s28, 6   ;;  %s2092_s8 = sld [smem:[#allocation21_spill]] }
 0x194   : > { %s2093_s21 = smov %s1553_s22  ;;  %s2094_s22 = smov %s1557_s23 }
 0x195   : > { %s2095_s23 = smov %s1741_s13  ;;  %s2096_s24 = smov %s1569_s26 }
 0x196   : > { %s2097_s25 = smov %s1573_s27  ;;  %27 = sbr.rel (!%p25_p2) target bundleno = 16 (0x10), region = 125 }
 0x198   : > { %s2098_s26 = smov %s2091_s6 }
 0x199   : > { %s2099_s27 = smov %s2092_s8 }
 0x19b   :  { %943 = vsyncpa [#allocation3], 1 }
 0x19c   :  { %945 = vsyncpa [#allocation3 + $0x1], 1 }
 0x19d   :  { %946 = vsyncpa [#allocation6], 1 }
 0x19e   :  { %947 = vsyncpa [#allocation9], 1 }
 0x19f   :  { %948 = vsyncpa [#allocation4], 1 }
 0x1a0   :  { %950 = vsyncpa [#allocation4 + $0x1], 1 }
 0x1a1   :  { %951 = vsyncpa [#allocation12], 1 }
 0x1a2   :  { %953 = vsyncpa [#allocation12 + $0x1], 1 }

</bundles_post_ra>
